<compile_context>
chip_gen: v7x
topology: tpu7x:2x2x1
jax: 0.10.0
libtpu: 0.0.40
codegen_flags: <defaults>
</compile_context>

<pallas_src>
import functools
import math

import jax
import jax.numpy as jnp
from jax.experimental import pallas as pl
from jax.experimental.pallas import tpu as pltpu


# ----------------------------- Pallas kernel --------------------------------

def _bilstm_recurrence(gx, whh, *, T, B, H):
    """Fused fwd+rev LSTM recurrence over T unrolled steps, all in vregs.

    gx:  (T*B, 8H) input-gate preactivations (bias already added);
         lane layout per row: [i_f i_r | f_f f_r | g_f g_r | o_f o_r].
    whh: (2H, 8H) block-diagonal recurrent weights (rows = [h_fwd | h_rev]).

    Returns y: (T*B, 2H) value, rows t*B:(t+1)*B = time t,
    lanes [0:H] forward output, [H:2H] reverse output.
    """
    G = 2 * H          # per-gate lane width (fwd + rev stacked)
    W = 4 * G          # full gate lane width (= 128 for H=16)

    lane = jax.lax.broadcasted_iota(jnp.int32, (1, W), 1)
    fwd_mask = (lane % G) < H                       # forward-direction lanes
    g_mask = (lane >= 2 * G) & (lane < 3 * G)       # g-gate (tanh) lanes

    # Hoisted fwd/rev time selection: one sublane permute + one full-width
    # select per layer instead of two row-extracts + a select per step.
    gx_rev = jnp.concatenate(
        [gx[(T - 1 - s) * B:(T - s) * B, :] for s in range(T)], axis=0)
    gx_sel = jnp.where(fwd_mask, gx, gx_rev)

    h = jnp.zeros((B, G), jnp.float32)
    c = jnp.zeros((B, G), jnp.float32)

    hs = []
    # T is small & static -> fully unrolled, all indices static.
    for s in range(T):
        pre = gx_sel[s * B:(s + 1) * B, :] + jnp.dot(
            h, whh, preferred_element_type=jnp.float32)
        # 2 EUP pushes on the full 128-lane vreg instead of 4 sliced pushes.
        act = jnp.where(g_mask, jnp.tanh(pre), jax.nn.sigmoid(pre))
        i = act[:, 0 * G:1 * G]
        f = act[:, 1 * G:2 * G]
        g = act[:, 2 * G:3 * G]
        o = act[:, 3 * G:4 * G]
        c = f * c + i * g
        h = o * jnp.tanh(c)
        hs.append(h)

    # Assemble the layer output once (time order, lanes [fwd | rev]);
    # no per-step masked stores, no VMEM scratch.
    out_lane = jax.lax.broadcasted_iota(jnp.int32, (1, G), 1) < H
    y = jnp.concatenate(
        [jnp.where(out_lane, hs[t], hs[T - 1 - t]) for t in range(T)], axis=0)
    return y


def _bilstm2_kernel(x_ref, w_ref, o_ref, *, T, B, H, D):
    G = 2 * H
    # Static, 8-aligned row slices of the single packed weight operand.
    wih1 = w_ref[0:D, :]
    whh1 = w_ref[D:D + G, :]
    wih2 = w_ref[D + G:D + 2 * G, :]
    whh2 = w_ref[D + 2 * G:D + 3 * G, :]
    bias = w_ref[D + 3 * G:D + 3 * G + 8, :]
    b1 = bias[0:1, :]
    b2 = bias[1:2, :]

    # ---- layer 1: batched input projection, then fused bi-dir recurrence ----
    gx1 = jnp.dot(x_ref[...], wih1, preferred_element_type=jnp.float32) + b1
    y1 = _bilstm_recurrence(gx1, whh1, T=T, B=B, H=H)

    # ---- layer 2: input = layer-1 output (stays in vregs) -------------------
    gx2 = jnp.dot(y1, wih2, preferred_element_type=jnp.float32) + b2
    y2 = _bilstm_recurrence(gx2, whh2, T=T, B=B, H=H)

    o_ref[...] = y2   # the only store in the kernel


# ----------------------------- weight packing -------------------------------

def _pack_layer(dir_fwd, dir_rev, hidden):
    """Pack one layer's two directions into fused, lane-dense operands.

    Column layout (width 8H = 128 for H=16): gate-major, then direction, then
    unit, i.e. col = gate*2H + dir*H + unit with gate order (i, f, g, o).
    """
    H = hidden
    w_ih_f, w_hh_f, b_ih_f, b_hh_f = dir_fwd
    w_ih_r, w_hh_r, b_ih_r, b_hh_r = dir_rev
    D = w_ih_f.shape[1]

    # (D, 8H) stacked input weights (already transposed for x @ W)
    wih = jnp.transpose(
        jnp.stack([w_ih_f.reshape(4, H, D), w_ih_r.reshape(4, H, D)], axis=1),
        (3, 0, 1, 2)).reshape(D, 8 * H)

    # (1, 8H) fused bias (b_ih + b_hh, both directions)
    b = jnp.stack([(b_ih_f + b_hh_f).reshape(4, H),
                   (b_ih_r + b_hh_r).reshape(4, H)], axis=1).reshape(1, 8 * H)

    # (2H, 8H) block-diagonal recurrent weights: rows 0:H act on h_fwd,
    # rows H:2H act on h_rev; cross-direction blocks are zero.
    blk = jnp.zeros((2, H, 4, 2, H), jnp.float32)
    blk = blk.at[0, :, :, 0, :].set(
        jnp.transpose(w_hh_f.reshape(4, H, H), (2, 0, 1)))
    blk = blk.at[1, :, :, 1, :].set(
        jnp.transpose(w_hh_r.reshape(4, H, H), (2, 0, 1)))
    whh = blk.reshape(2 * H, 8 * H)
    return wih, whh, b


# ------------------------------- forward pass --------------------------------

def recurrent_layer_forward(x, params, hidden_size=16):
    """Equivalent of RecurrentLayer.forward: returns rnn_output (T, B, 2H)."""
    T, B, D = x.shape
    H = hidden_size
    G = 2 * H
    assert D % 8 == 0 and G % 8 == 0   # keeps all packed row offsets 8-aligned

    wih1, whh1, b1 = _pack_layer(params[0]["fwd"], params[0]["rev"], H)
    wih2, whh2, b2 = _pack_layer(params[1]["fwd"], params[1]["rev"], H)

    # Single packed (D + 3*2H + 8, 8H) weight operand: 2 input DMAs total.
    bias_blk = jnp.zeros((8, 8 * H), jnp.float32)
    bias_blk = bias_blk.at[0].set(b1[0]).at[1].set(b2[0])
    w_all = jnp.concatenate([wih1, whh1, wih2, whh2, bias_blk], axis=0)

    kern = functools.partial(_bilstm2_kernel, T=T, B=B, H=H, D=D)
    vmem_spec = pl.BlockSpec(memory_space=pltpu.MemorySpace.VMEM)

    out = pl.pallas_call(
        kern,
        out_shape=jax.ShapeDtypeStruct((T * B, 2 * H), jnp.float32),
        in_specs=[vmem_spec, vmem_spec],
        out_specs=vmem_spec,
        compiler_params=pltpu.CompilerParams(
            vmem_limit_bytes=16 * 1024 * 1024),
    )(x.reshape(T * B, D), w_all)

    return out.reshape(T, B, 2 * H)


# --------------------------- parameter construction --------------------------

def init_params(key, input_size=32, hidden_size=16, num_layers=2):
    """PyTorch-style uniform(-1/sqrt(H), 1/sqrt(H)) init; raw PyTorch layout."""
    k = 1.0 / math.sqrt(hidden_size)
    params = []
    for layer in range(num_layers):
        d_in = input_size if layer == 0 else 2 * hidden_size
        layer_p = {}
        for direction in ("fwd", "rev"):
            key, k1, k2, k3, k4 = jax.random.split(key, 5)
            w_ih = jax.random.uniform(k1, (4 * hidden_size, d_in),
                                      minval=-k, maxval=k, dtype=jnp.float32)
            w_hh = jax.random.uniform(k2, (4 * hidden_size, hidden_size),
                                      minval=-k, maxval=k, dtype=jnp.float32)
            b_ih = jax.random.uniform(k3, (4 * hidden_size,),
                                      minval=-k, maxval=k, dtype=jnp.float32)
            b_hh = jax.random.uniform(k4, (4 * hidden_size,),
                                      minval=-k, maxval=k, dtype=jnp.float32)
            layer_p[direction] = (w_ih, w_hh, b_ih, b_hh)
        params.append(layer_p)
    return params


# ------------------------- pure-JAX reference check --------------------------

def _lstm_dir_ref(x, w_ih, w_hh, b_ih, b_hh, reverse):
    T, B, _ = x.shape
    H = w_hh.shape[1]
    xs = x[::-1] if reverse else x
    b = (b_ih + b_hh)[None, :]

    def step(carry, xt):
        h, c = carry
        gates = xt @ w_ih.T + h @ w_hh.T + b
        i = jax.nn.sigmoid(gates[:, 0 * H:1 * H])
        f = jax.nn.sigmoid(gates[:, 1 * H:2 * H])
        g = jnp.tanh(gates[:, 2 * H:3 * H])
        o = jax.nn.sigmoid(gates[:, 3 * H:4 * H])
        c = f * c + i * g
        h = o * jnp.tanh(c)
        return (h, c), h

    init = (jnp.zeros((B, H), jnp.float32), jnp.zeros((B, H), jnp.float32))
    _, hs = jax.lax.scan(step, init, xs)
    return hs[::-1] if reverse else hs


def _forward_ref(x, params):
    out = x
    for layer_p in params:
        fwd = _lstm_dir_ref(out, *layer_p["fwd"], reverse=False)
        rev = _lstm_dir_ref(out, *layer_p["rev"], reverse=True)
        out = jnp.concatenate([fwd, rev], axis=-1)
    return out


# ----------------------------------- main ------------------------------------

if __name__ == "__main__":
    INPUT_SIZE, HIDDEN_SIZE = 32, 16
    SEQ, BATCH = 8, 2

    key = jax.random.PRNGKey(0)
    key, xkey = jax.random.split(key)
    x = jax.random.normal(xkey, (SEQ, BATCH, INPUT_SIZE), dtype=jnp.float32)

    params = init_params(key, INPUT_SIZE, HIDDEN_SIZE, num_layers=2)

    fwd_fn = jax.jit(functools.partial(recurrent_layer_forward,
                                       hidden_size=HIDDEN_SIZE))
    out = jax.block_until_ready(fwd_fn(x, params))

    assert out.shape == (SEQ, BATCH, 2 * HIDDEN_SIZE), out.shape

    ref = jax.block_until_ready(_forward_ref(x, params))
    assert jnp.allclose(out, ref, atol=1e-4, rtol=1e-4), \
        float(jnp.max(jnp.abs(out - ref)))

    print("KERNEL_OK")
</pallas_src>

<mosaic_0001>
module attributes {stable_mosaic.version = 11 : i64} {
  func.func @_bilstm2_kernel(%arg0: memref<16x32xf32, #tpu.memory_space<vmem>>, %arg1: memref<136x128xf32, #tpu.memory_space<vmem>>, %arg2: memref<16x32xf32, #tpu.memory_space<vmem>>) attributes {dimension_semantics = [], scalar_prefetch = 0 : i64, scratch_operands = 0 : i64, tpu.core_type = #tpu.core_type<tc>} {
    %c0 = arith.constant 0 : index
    %c0_0 = arith.constant 0 : index
    %0 = vector.load %arg1[%c0, %c0_0] : memref<136x128xf32, #tpu.memory_space<vmem>>, vector<32x128xf32>
    %c32 = arith.constant 32 : index
    %c0_1 = arith.constant 0 : index
    %1 = vector.load %arg1[%c32, %c0_1] : memref<136x128xf32, #tpu.memory_space<vmem>>, vector<32x128xf32>
    %c64 = arith.constant 64 : index
    %c0_2 = arith.constant 0 : index
    %2 = vector.load %arg1[%c64, %c0_2] : memref<136x128xf32, #tpu.memory_space<vmem>>, vector<32x128xf32>
    %c96 = arith.constant 96 : index
    %c0_3 = arith.constant 0 : index
    %3 = vector.load %arg1[%c96, %c0_3] : memref<136x128xf32, #tpu.memory_space<vmem>>, vector<32x128xf32>
    %c128 = arith.constant 128 : index
    %c0_4 = arith.constant 0 : index
    %4 = vector.load %arg1[%c128, %c0_4] : memref<136x128xf32, #tpu.memory_space<vmem>>, vector<8x128xf32>
    %5 = vector.extract_strided_slice %4 {offsets = [0, 0], sizes = [1, 128], strides = [1, 1]} : vector<8x128xf32> to vector<1x128xf32>
    %6 = vector.extract_strided_slice %4 {offsets = [1, 0], sizes = [1, 128], strides = [1, 1]} : vector<8x128xf32> to vector<1x128xf32>
    %c0_5 = arith.constant 0 : index
    %c0_6 = arith.constant 0 : index
    %7 = vector.load %arg0[%c0_5, %c0_6] : memref<16x32xf32, #tpu.memory_space<vmem>>, vector<16x32xf32>
    %cst = arith.constant dense<0.000000e+00> : vector<16x128xf32>
    %8 = tpu.matmul %7, %0, %cst {dimension_numbers = #tpu.dot_dimension_numbers<[1], [0], [0], [1], [0, 0, 1, 1], [], []>} : vector<16x32xf32>, vector<32x128xf32>, vector<16x128xf32> -> vector<16x128xf32>
    %9 = vector.broadcast %5 : vector<1x128xf32> to vector<16x128xf32>
    %10 = arith.addf %8, %9 : vector<16x128xf32>
    %11 = tpu.iota {dimensions = array<i32: 1>} : vector<1x128xi32>
    %c32_i32 = arith.constant 32 : i32
    %c0_i32 = arith.constant 0 : i32
    %12 = arith.cmpi eq, %c32_i32, %c0_i32 : i32
    %c1_i32 = arith.constant 1 : i32
    %13 = arith.select %12, %c1_i32, %c32_i32 : i32
    %14 = vector.broadcast %13 : i32 to vector<1x128xi32>
    %15 = arith.remsi %11, %14 : vector<1x128xi32>
    %c0_i32_7 = arith.constant 0 : i32
    %16 = vector.broadcast %c0_i32_7 : i32 to vector<1x128xi32>
    %17 = arith.cmpi ne, %15, %16 : vector<1x128xi32>
    %c0_i32_8 = arith.constant 0 : i32
    %18 = vector.broadcast %c0_i32_8 : i32 to vector<1x128xi32>
    %19 = arith.cmpi slt, %15, %18 : vector<1x128xi32>
    %c0_i32_9 = arith.constant 0 : i32
    %20 = arith.cmpi slt, %13, %c0_i32_9 : i32
    %21 = vector.broadcast %20 : i1 to vector<1x128xi1>
    %22 = vector.broadcast %21 : vector<1x128xi1> to vector<1x128xi1>
    %23 = arith.xori %19, %22 : vector<1x128xi1>
    %24 = arith.andi %23, %17 : vector<1x128xi1>
    %25 = vector.broadcast %13 : i32 to vector<1x128xi32>
    %26 = arith.addi %15, %25 : vector<1x128xi32>
    %27 = arith.select %24, %26, %15 : vector<1x128xi1>, vector<1x128xi32>
    %c16_i32 = arith.constant 16 : i32
    %28 = vector.broadcast %c16_i32 : i32 to vector<1x128xi32>
    %29 = arith.cmpi slt, %27, %28 : vector<1x128xi32>
    %c64_i32 = arith.constant 64 : i32
    %30 = vector.broadcast %c64_i32 : i32 to vector<1x128xi32>
    %31 = arith.cmpi sge, %11, %30 : vector<1x128xi32>
    %c96_i32 = arith.constant 96 : i32
    %32 = vector.broadcast %c96_i32 : i32 to vector<1x128xi32>
    %33 = arith.cmpi slt, %11, %32 : vector<1x128xi32>
    %34 = arith.andi %31, %33 : vector<1x128xi1>
    %35 = vector.extract_strided_slice %10 {offsets = [14, 0], sizes = [2, 128], strides = [1, 1]} : vector<16x128xf32> to vector<2x128xf32>
    %36 = vector.extract_strided_slice %10 {offsets = [12, 0], sizes = [2, 128], strides = [1, 1]} : vector<16x128xf32> to vector<2x128xf32>
    %37 = vector.extract_strided_slice %10 {offsets = [10, 0], sizes = [2, 128], strides = [1, 1]} : vector<16x128xf32> to vector<2x128xf32>
    %38 = vector.extract_strided_slice %10 {offsets = [8, 0], sizes = [2, 128], strides = [1, 1]} : vector<16x128xf32> to vector<2x128xf32>
    %39 = vector.extract_strided_slice %10 {offsets = [6, 0], sizes = [2, 128], strides = [1, 1]} : vector<16x128xf32> to vector<2x128xf32>
    %40 = vector.extract_strided_slice %10 {offsets = [4, 0], sizes = [2, 128], strides = [1, 1]} : vector<16x128xf32> to vector<2x128xf32>
    %41 = vector.extract_strided_slice %10 {offsets = [2, 0], sizes = [2, 128], strides = [1, 1]} : vector<16x128xf32> to vector<2x128xf32>
    %42 = vector.extract_strided_slice %10 {offsets = [0, 0], sizes = [2, 128], strides = [1, 1]} : vector<16x128xf32> to vector<2x128xf32>
    %43 = tpu.concatenate %35, %36, %37, %38, %39, %40, %41, %42 in 0 : vector<2x128xf32>, vector<2x128xf32>, vector<2x128xf32>, vector<2x128xf32>, vector<2x128xf32>, vector<2x128xf32>, vector<2x128xf32>, vector<2x128xf32> -> vector<16x128xf32>
    %44 = vector.shape_cast %29 : vector<1x128xi1> to vector<1x128xi1>
    %45 = vector.broadcast %44 : vector<1x128xi1> to vector<16x128xi1>
    %46 = arith.select %45, %10, %43 : vector<16x128xi1>, vector<16x128xf32>
    %cst_10 = arith.constant 0.000000e+00 : f32
    %47 = vector.broadcast %cst_10 : f32 to vector<2x32xf32>
    %cst_11 = arith.constant 0.000000e+00 : f32
    %48 = vector.broadcast %cst_11 : f32 to vector<2x32xf32>
    %49 = vector.extract_strided_slice %46 {offsets = [0, 0], sizes = [2, 128], strides = [1, 1]} : vector<16x128xf32> to vector<2x128xf32>
    %cst_12 = arith.constant dense<0.000000e+00> : vector<2x128xf32>
    %50 = tpu.matmul %47, %1, %cst_12 {dimension_numbers = #tpu.dot_dimension_numbers<[1], [0], [0], [1], [0, 0, 1, 1], [], []>} : vector<2x32xf32>, vector<32x128xf32>, vector<2x128xf32> -> vector<2x128xf32>
    %51 = arith.addf %49, %50 : vector<2x128xf32>
    %52 = math.tanh %51 : vector<2x128xf32>
    %53 = arith.negf %51 : vector<2x128xf32>
    %54 = math.exp %53 : vector<2x128xf32>
    %cst_13 = arith.constant 1.000000e+00 : f32
    %55 = vector.broadcast %cst_13 : f32 to vector<2x128xf32>
    %56 = arith.addf %55, %54 : vector<2x128xf32>
    %57 = arith.divf %55, %56 : vector<2x128xf32>
    %58 = vector.shape_cast %34 : vector<1x128xi1> to vector<1x128xi1>
    %59 = vector.broadcast %58 : vector<1x128xi1> to vector<2x128xi1>
    %60 = arith.select %59, %52, %57 : vector<2x128xi1>, vector<2x128xf32>
    %61 = vector.extract_strided_slice %60 {offsets = [0, 0], sizes = [2, 32], strides = [1, 1]} : vector<2x128xf32> to vector<2x32xf32>
    %62 = vector.extract_strided_slice %60 {offsets = [0, 32], sizes = [2, 32], strides = [1, 1]} : vector<2x128xf32> to vector<2x32xf32>
    %63 = vector.extract_strided_slice %60 {offsets = [0, 64], sizes = [2, 32], strides = [1, 1]} : vector<2x128xf32> to vector<2x32xf32>
    %64 = vector.extract_strided_slice %60 {offsets = [0, 96], sizes = [2, 32], strides = [1, 1]} : vector<2x128xf32> to vector<2x32xf32>
    %65 = arith.mulf %62, %48 : vector<2x32xf32>
    %66 = arith.mulf %61, %63 : vector<2x32xf32>
    %67 = arith.addf %65, %66 : vector<2x32xf32>
    %68 = math.tanh %67 : vector<2x32xf32>
    %69 = arith.mulf %64, %68 : vector<2x32xf32>
    %70 = vector.extract_strided_slice %46 {offsets = [2, 0], sizes = [2, 128], strides = [1, 1]} : vector<16x128xf32> to vector<2x128xf32>
    %cst_14 = arith.constant dense<0.000000e+00> : vector<2x128xf32>
    %71 = tpu.matmul %69, %1, %cst_14 {dimension_numbers = #tpu.dot_dimension_numbers<[1], [0], [0], [1], [0, 0, 1, 1], [], []>} : vector<2x32xf32>, vector<32x128xf32>, vector<2x128xf32> -> vector<2x128xf32>
    %72 = arith.addf %70, %71 : vector<2x128xf32>
    %73 = math.tanh %72 : vector<2x128xf32>
    %74 = arith.negf %72 : vector<2x128xf32>
    %75 = math.exp %74 : vector<2x128xf32>
    %cst_15 = arith.constant 1.000000e+00 : f32
    %76 = vector.broadcast %cst_15 : f32 to vector<2x128xf32>
    %77 = arith.addf %76, %75 : vector<2x128xf32>
    %78 = arith.divf %76, %77 : vector<2x128xf32>
    %79 = vector.shape_cast %34 : vector<1x128xi1> to vector<1x128xi1>
    %80 = vector.broadcast %79 : vector<1x128xi1> to vector<2x128xi1>
    %81 = arith.select %80, %73, %78 : vector<2x128xi1>, vector<2x128xf32>
    %82 = vector.extract_strided_slice %81 {offsets = [0, 0], sizes = [2, 32], strides = [1, 1]} : vector<2x128xf32> to vector<2x32xf32>
    %83 = vector.extract_strided_slice %81 {offsets = [0, 32], sizes = [2, 32], strides = [1, 1]} : vector<2x128xf32> to vector<2x32xf32>
    %84 = vector.extract_strided_slice %81 {offsets = [0, 64], sizes = [2, 32], strides = [1, 1]} : vector<2x128xf32> to vector<2x32xf32>
    %85 = vector.extract_strided_slice %81 {offsets = [0, 96], sizes = [2, 32], strides = [1, 1]} : vector<2x128xf32> to vector<2x32xf32>
    %86 = arith.mulf %83, %67 : vector<2x32xf32>
    %87 = arith.mulf %82, %84 : vector<2x32xf32>
    %88 = arith.addf %86, %87 : vector<2x32xf32>
    %89 = math.tanh %88 : vector<2x32xf32>
    %90 = arith.mulf %85, %89 : vector<2x32xf32>
    %91 = vector.extract_strided_slice %46 {offsets = [4, 0], sizes = [2, 128], strides = [1, 1]} : vector<16x128xf32> to vector<2x128xf32>
    %cst_16 = arith.constant dense<0.000000e+00> : vector<2x128xf32>
    %92 = tpu.matmul %90, %1, %cst_16 {dimension_numbers = #tpu.dot_dimension_numbers<[1], [0], [0], [1], [0, 0, 1, 1], [], []>} : vector<2x32xf32>, vector<32x128xf32>, vector<2x128xf32> -> vector<2x128xf32>
    %93 = arith.addf %91, %92 : vector<2x128xf32>
    %94 = math.tanh %93 : vector<2x128xf32>
    %95 = arith.negf %93 : vector<2x128xf32>
    %96 = math.exp %95 : vector<2x128xf32>
    %cst_17 = arith.constant 1.000000e+00 : f32
    %97 = vector.broadcast %cst_17 : f32 to vector<2x128xf32>
    %98 = arith.addf %97, %96 : vector<2x128xf32>
    %99 = arith.divf %97, %98 : vector<2x128xf32>
    %100 = vector.shape_cast %34 : vector<1x128xi1> to vector<1x128xi1>
    %101 = vector.broadcast %100 : vector<1x128xi1> to vector<2x128xi1>
    %102 = arith.select %101, %94, %99 : vector<2x128xi1>, vector<2x128xf32>
    %103 = vector.extract_strided_slice %102 {offsets = [0, 0], sizes = [2, 32], strides = [1, 1]} : vector<2x128xf32> to vector<2x32xf32>
    %104 = vector.extract_strided_slice %102 {offsets = [0, 32], sizes = [2, 32], strides = [1, 1]} : vector<2x128xf32> to vector<2x32xf32>
    %105 = vector.extract_strided_slice %102 {offsets = [0, 64], sizes = [2, 32], strides = [1, 1]} : vector<2x128xf32> to vector<2x32xf32>
    %106 = vector.extract_strided_slice %102 {offsets = [0, 96], sizes = [2, 32], strides = [1, 1]} : vector<2x128xf32> to vector<2x32xf32>
    %107 = arith.mulf %104, %88 : vector<2x32xf32>
    %108 = arith.mulf %103, %105 : vector<2x32xf32>
    %109 = arith.addf %107, %108 : vector<2x32xf32>
    %110 = math.tanh %109 : vector<2x32xf32>
    %111 = arith.mulf %106, %110 : vector<2x32xf32>
    %112 = vector.extract_strided_slice %46 {offsets = [6, 0], sizes = [2, 128], strides = [1, 1]} : vector<16x128xf32> to vector<2x128xf32>
    %cst_18 = arith.constant dense<0.000000e+00> : vector<2x128xf32>
    %113 = tpu.matmul %111, %1, %cst_18 {dimension_numbers = #tpu.dot_dimension_numbers<[1], [0], [0], [1], [0, 0, 1, 1], [], []>} : vector<2x32xf32>, vector<32x128xf32>, vector<2x128xf32> -> vector<2x128xf32>
    %114 = arith.addf %112, %113 : vector<2x128xf32>
    %115 = math.tanh %114 : vector<2x128xf32>
    %116 = arith.negf %114 : vector<2x128xf32>
    %117 = math.exp %116 : vector<2x128xf32>
    %cst_19 = arith.constant 1.000000e+00 : f32
    %118 = vector.broadcast %cst_19 : f32 to vector<2x128xf32>
    %119 = arith.addf %118, %117 : vector<2x128xf32>
    %120 = arith.divf %118, %119 : vector<2x128xf32>
    %121 = vector.shape_cast %34 : vector<1x128xi1> to vector<1x128xi1>
    %122 = vector.broadcast %121 : vector<1x128xi1> to vector<2x128xi1>
    %123 = arith.select %122, %115, %120 : vector<2x128xi1>, vector<2x128xf32>
    %124 = vector.extract_strided_slice %123 {offsets = [0, 0], sizes = [2, 32], strides = [1, 1]} : vector<2x128xf32> to vector<2x32xf32>
    %125 = vector.extract_strided_slice %123 {offsets = [0, 32], sizes = [2, 32], strides = [1, 1]} : vector<2x128xf32> to vector<2x32xf32>
    %126 = vector.extract_strided_slice %123 {offsets = [0, 64], sizes = [2, 32], strides = [1, 1]} : vector<2x128xf32> to vector<2x32xf32>
    %127 = vector.extract_strided_slice %123 {offsets = [0, 96], sizes = [2, 32], strides = [1, 1]} : vector<2x128xf32> to vector<2x32xf32>
    %128 = arith.mulf %125, %109 : vector<2x32xf32>
    %129 = arith.mulf %124, %126 : vector<2x32xf32>
    %130 = arith.addf %128, %129 : vector<2x32xf32>
    %131 = math.tanh %130 : vector<2x32xf32>
    %132 = arith.mulf %127, %131 : vector<2x32xf32>
    %133 = vector.extract_strided_slice %46 {offsets = [8, 0], sizes = [2, 128], strides = [1, 1]} : vector<16x128xf32> to vector<2x128xf32>
    %cst_20 = arith.constant dense<0.000000e+00> : vector<2x128xf32>
    %134 = tpu.matmul %132, %1, %cst_20 {dimension_numbers = #tpu.dot_dimension_numbers<[1], [0], [0], [1], [0, 0, 1, 1], [], []>} : vector<2x32xf32>, vector<32x128xf32>, vector<2x128xf32> -> vector<2x128xf32>
    %135 = arith.addf %133, %134 : vector<2x128xf32>
    %136 = math.tanh %135 : vector<2x128xf32>
    %137 = arith.negf %135 : vector<2x128xf32>
    %138 = math.exp %137 : vector<2x128xf32>
    %cst_21 = arith.constant 1.000000e+00 : f32
    %139 = vector.broadcast %cst_21 : f32 to vector<2x128xf32>
    %140 = arith.addf %139, %138 : vector<2x128xf32>
    %141 = arith.divf %139, %140 : vector<2x128xf32>
    %142 = vector.shape_cast %34 : vector<1x128xi1> to vector<1x128xi1>
    %143 = vector.broadcast %142 : vector<1x128xi1> to vector<2x128xi1>
    %144 = arith.select %143, %136, %141 : vector<2x128xi1>, vector<2x128xf32>
    %145 = vector.extract_strided_slice %144 {offsets = [0, 0], sizes = [2, 32], strides = [1, 1]} : vector<2x128xf32> to vector<2x32xf32>
    %146 = vector.extract_strided_slice %144 {offsets = [0, 32], sizes = [2, 32], strides = [1, 1]} : vector<2x128xf32> to vector<2x32xf32>
    %147 = vector.extract_strided_slice %144 {offsets = [0, 64], sizes = [2, 32], strides = [1, 1]} : vector<2x128xf32> to vector<2x32xf32>
    %148 = vector.extract_strided_slice %144 {offsets = [0, 96], sizes = [2, 32], strides = [1, 1]} : vector<2x128xf32> to vector<2x32xf32>
    %149 = arith.mulf %146, %130 : vector<2x32xf32>
    %150 = arith.mulf %145, %147 : vector<2x32xf32>
    %151 = arith.addf %149, %150 : vector<2x32xf32>
    %152 = math.tanh %151 : vector<2x32xf32>
    %153 = arith.mulf %148, %152 : vector<2x32xf32>
    %154 = vector.extract_strided_slice %46 {offsets = [10, 0], sizes = [2, 128], strides = [1, 1]} : vector<16x128xf32> to vector<2x128xf32>
    %cst_22 = arith.constant dense<0.000000e+00> : vector<2x128xf32>
    %155 = tpu.matmul %153, %1, %cst_22 {dimension_numbers = #tpu.dot_dimension_numbers<[1], [0], [0], [1], [0, 0, 1, 1], [], []>} : vector<2x32xf32>, vector<32x128xf32>, vector<2x128xf32> -> vector<2x128xf32>
    %156 = arith.addf %154, %155 : vector<2x128xf32>
    %157 = math.tanh %156 : vector<2x128xf32>
    %158 = arith.negf %156 : vector<2x128xf32>
    %159 = math.exp %158 : vector<2x128xf32>
    %cst_23 = arith.constant 1.000000e+00 : f32
    %160 = vector.broadcast %cst_23 : f32 to vector<2x128xf32>
    %161 = arith.addf %160, %159 : vector<2x128xf32>
    %162 = arith.divf %160, %161 : vector<2x128xf32>
    %163 = vector.shape_cast %34 : vector<1x128xi1> to vector<1x128xi1>
    %164 = vector.broadcast %163 : vector<1x128xi1> to vector<2x128xi1>
    %165 = arith.select %164, %157, %162 : vector<2x128xi1>, vector<2x128xf32>
    %166 = vector.extract_strided_slice %165 {offsets = [0, 0], sizes = [2, 32], strides = [1, 1]} : vector<2x128xf32> to vector<2x32xf32>
    %167 = vector.extract_strided_slice %165 {offsets = [0, 32], sizes = [2, 32], strides = [1, 1]} : vector<2x128xf32> to vector<2x32xf32>
    %168 = vector.extract_strided_slice %165 {offsets = [0, 64], sizes = [2, 32], strides = [1, 1]} : vector<2x128xf32> to vector<2x32xf32>
    %169 = vector.extract_strided_slice %165 {offsets = [0, 96], sizes = [2, 32], strides = [1, 1]} : vector<2x128xf32> to vector<2x32xf32>
    %170 = arith.mulf %167, %151 : vector<2x32xf32>
    %171 = arith.mulf %166, %168 : vector<2x32xf32>
    %172 = arith.addf %170, %171 : vector<2x32xf32>
    %173 = math.tanh %172 : vector<2x32xf32>
    %174 = arith.mulf %169, %173 : vector<2x32xf32>
    %175 = vector.extract_strided_slice %46 {offsets = [12, 0], sizes = [2, 128], strides = [1, 1]} : vector<16x128xf32> to vector<2x128xf32>
    %cst_24 = arith.constant dense<0.000000e+00> : vector<2x128xf32>
    %176 = tpu.matmul %174, %1, %cst_24 {dimension_numbers = #tpu.dot_dimension_numbers<[1], [0], [0], [1], [0, 0, 1, 1], [], []>} : vector<2x32xf32>, vector<32x128xf32>, vector<2x128xf32> -> vector<2x128xf32>
    %177 = arith.addf %175, %176 : vector<2x128xf32>
    %178 = math.tanh %177 : vector<2x128xf32>
    %179 = arith.negf %177 : vector<2x128xf32>
    %180 = math.exp %179 : vector<2x128xf32>
    %cst_25 = arith.constant 1.000000e+00 : f32
    %181 = vector.broadcast %cst_25 : f32 to vector<2x128xf32>
    %182 = arith.addf %181, %180 : vector<2x128xf32>
    %183 = arith.divf %181, %182 : vector<2x128xf32>
    %184 = vector.shape_cast %34 : vector<1x128xi1> to vector<1x128xi1>
    %185 = vector.broadcast %184 : vector<1x128xi1> to vector<2x128xi1>
    %186 = arith.select %185, %178, %183 : vector<2x128xi1>, vector<2x128xf32>
    %187 = vector.extract_strided_slice %186 {offsets = [0, 0], sizes = [2, 32], strides = [1, 1]} : vector<2x128xf32> to vector<2x32xf32>
    %188 = vector.extract_strided_slice %186 {offsets = [0, 32], sizes = [2, 32], strides = [1, 1]} : vector<2x128xf32> to vector<2x32xf32>
    %189 = vector.extract_strided_slice %186 {offsets = [0, 64], sizes = [2, 32], strides = [1, 1]} : vector<2x128xf32> to vector<2x32xf32>
    %190 = vector.extract_strided_slice %186 {offsets = [0, 96], sizes = [2, 32], strides = [1, 1]} : vector<2x128xf32> to vector<2x32xf32>
    %191 = arith.mulf %188, %172 : vector<2x32xf32>
    %192 = arith.mulf %187, %189 : vector<2x32xf32>
    %193 = arith.addf %191, %192 : vector<2x32xf32>
    %194 = math.tanh %193 : vector<2x32xf32>
    %195 = arith.mulf %190, %194 : vector<2x32xf32>
    %196 = vector.extract_strided_slice %46 {offsets = [14, 0], sizes = [2, 128], strides = [1, 1]} : vector<16x128xf32> to vector<2x128xf32>
    %cst_26 = arith.constant dense<0.000000e+00> : vector<2x128xf32>
    %197 = tpu.matmul %195, %1, %cst_26 {dimension_numbers = #tpu.dot_dimension_numbers<[1], [0], [0], [1], [0, 0, 1, 1], [], []>} : vector<2x32xf32>, vector<32x128xf32>, vector<2x128xf32> -> vector<2x128xf32>
    %198 = arith.addf %196, %197 : vector<2x128xf32>
    %199 = math.tanh %198 : vector<2x128xf32>
    %200 = arith.negf %198 : vector<2x128xf32>
    %201 = math.exp %200 : vector<2x128xf32>
    %cst_27 = arith.constant 1.000000e+00 : f32
    %202 = vector.broadcast %cst_27 : f32 to vector<2x128xf32>
    %203 = arith.addf %202, %201 : vector<2x128xf32>
    %204 = arith.divf %202, %203 : vector<2x128xf32>
    %205 = vector.shape_cast %34 : vector<1x128xi1> to vector<1x128xi1>
    %206 = vector.broadcast %205 : vector<1x128xi1> to vector<2x128xi1>
    %207 = arith.select %206, %199, %204 : vector<2x128xi1>, vector<2x128xf32>
    %208 = vector.extract_strided_slice %207 {offsets = [0, 0], sizes = [2, 32], strides = [1, 1]} : vector<2x128xf32> to vector<2x32xf32>
    %209 = vector.extract_strided_slice %207 {offsets = [0, 32], sizes = [2, 32], strides = [1, 1]} : vector<2x128xf32> to vector<2x32xf32>
    %210 = vector.extract_strided_slice %207 {offsets = [0, 64], sizes = [2, 32], strides = [1, 1]} : vector<2x128xf32> to vector<2x32xf32>
    %211 = vector.extract_strided_slice %207 {offsets = [0, 96], sizes = [2, 32], strides = [1, 1]} : vector<2x128xf32> to vector<2x32xf32>
    %212 = arith.mulf %209, %193 : vector<2x32xf32>
    %213 = arith.mulf %208, %210 : vector<2x32xf32>
    %214 = arith.addf %212, %213 : vector<2x32xf32>
    %215 = math.tanh %214 : vector<2x32xf32>
    %216 = arith.mulf %211, %215 : vector<2x32xf32>
    %217 = tpu.iota {dimensions = array<i32: 1>} : vector<1x32xi32>
    %c16_i32_28 = arith.constant 16 : i32
    %218 = vector.broadcast %c16_i32_28 : i32 to vector<1x32xi32>
    %219 = arith.cmpi slt, %217, %218 : vector<1x32xi32>
    %220 = vector.shape_cast %219 : vector<1x32xi1> to vector<1x32xi1>
    %221 = vector.broadcast %220 : vector<1x32xi1> to vector<2x32xi1>
    %222 = arith.select %221, %69, %216 : vector<2x32xi1>, vector<2x32xf32>
    %223 = vector.shape_cast %219 : vector<1x32xi1> to vector<1x32xi1>
    %224 = vector.broadcast %223 : vector<1x32xi1> to vector<2x32xi1>
    %225 = arith.select %224, %90, %195 : vector<2x32xi1>, vector<2x32xf32>
    %226 = vector.shape_cast %219 : vector<1x32xi1> to vector<1x32xi1>
    %227 = vector.broadcast %226 : vector<1x32xi1> to vector<2x32xi1>
    %228 = arith.select %227, %111, %174 : vector<2x32xi1>, vector<2x32xf32>
    %229 = vector.shape_cast %219 : vector<1x32xi1> to vector<1x32xi1>
    %230 = vector.broadcast %229 : vector<1x32xi1> to vector<2x32xi1>
    %231 = arith.select %230, %132, %153 : vector<2x32xi1>, vector<2x32xf32>
    %232 = vector.shape_cast %219 : vector<1x32xi1> to vector<1x32xi1>
    %233 = vector.broadcast %232 : vector<1x32xi1> to vector<2x32xi1>
    %234 = arith.select %233, %153, %132 : vector<2x32xi1>, vector<2x32xf32>
    %235 = vector.shape_cast %219 : vector<1x32xi1> to vector<1x32xi1>
    %236 = vector.broadcast %235 : vector<1x32xi1> to vector<2x32xi1>
    %237 = arith.select %236, %174, %111 : vector<2x32xi1>, vector<2x32xf32>
    %238 = vector.shape_cast %219 : vector<1x32xi1> to vector<1x32xi1>
    %239 = vector.broadcast %238 : vector<1x32xi1> to vector<2x32xi1>
    %240 = arith.select %239, %195, %90 : vector<2x32xi1>, vector<2x32xf32>
    %241 = vector.shape_cast %219 : vector<1x32xi1> to vector<1x32xi1>
    %242 = vector.broadcast %241 : vector<1x32xi1> to vector<2x32xi1>
    %243 = arith.select %242, %216, %69 : vector<2x32xi1>, vector<2x32xf32>
    %244 = tpu.concatenate %222, %225, %228, %231, %234, %237, %240, %243 in 0 : vector<2x32xf32>, vector<2x32xf32>, vector<2x32xf32>, vector<2x32xf32>, vector<2x32xf32>, vector<2x32xf32>, vector<2x32xf32>, vector<2x32xf32> -> vector<16x32xf32>
    %cst_29 = arith.constant dense<0.000000e+00> : vector<16x128xf32>
    %245 = tpu.matmul %244, %2, %cst_29 {dimension_numbers = #tpu.dot_dimension_numbers<[1], [0], [0], [1], [0, 0, 1, 1], [], []>} : vector<16x32xf32>, vector<32x128xf32>, vector<16x128xf32> -> vector<16x128xf32>
    %246 = vector.broadcast %6 : vector<1x128xf32> to vector<16x128xf32>
    %247 = arith.addf %245, %246 : vector<16x128xf32>
    %248 = tpu.iota {dimensions = array<i32: 1>} : vector<1x128xi32>
    %c32_i32_30 = arith.constant 32 : i32
    %c0_i32_31 = arith.constant 0 : i32
    %249 = arith.cmpi eq, %c32_i32_30, %c0_i32_31 : i32
    %c1_i32_32 = arith.constant 1 : i32
    %250 = arith.select %249, %c1_i32_32, %c32_i32_30 : i32
    %251 = vector.broadcast %250 : i32 to vector<1x128xi32>
    %252 = arith.remsi %248, %251 : vector<1x128xi32>
    %c0_i32_33 = arith.constant 0 : i32
    %253 = vector.broadcast %c0_i32_33 : i32 to vector<1x128xi32>
    %254 = arith.cmpi ne, %252, %253 : vector<1x128xi32>
    %c0_i32_34 = arith.constant 0 : i32
    %255 = vector.broadcast %c0_i32_34 : i32 to vector<1x128xi32>
    %256 = arith.cmpi slt, %252, %255 : vector<1x128xi32>
    %c0_i32_35 = arith.constant 0 : i32
    %257 = arith.cmpi slt, %250, %c0_i32_35 : i32
    %258 = vector.broadcast %257 : i1 to vector<1x128xi1>
    %259 = vector.broadcast %258 : vector<1x128xi1> to vector<1x128xi1>
    %260 = arith.xori %256, %259 : vector<1x128xi1>
    %261 = arith.andi %260, %254 : vector<1x128xi1>
    %262 = vector.broadcast %250 : i32 to vector<1x128xi32>
    %263 = arith.addi %252, %262 : vector<1x128xi32>
    %264 = arith.select %261, %263, %252 : vector<1x128xi1>, vector<1x128xi32>
    %c16_i32_36 = arith.constant 16 : i32
    %265 = vector.broadcast %c16_i32_36 : i32 to vector<1x128xi32>
    %266 = arith.cmpi slt, %264, %265 : vector<1x128xi32>
    %c64_i32_37 = arith.constant 64 : i32
    %267 = vector.broadcast %c64_i32_37 : i32 to vector<1x128xi32>
    %268 = arith.cmpi sge, %248, %267 : vector<1x128xi32>
    %c96_i32_38 = arith.constant 96 : i32
    %269 = vector.broadcast %c96_i32_38 : i32 to vector<1x128xi32>
    %270 = arith.cmpi slt, %248, %269 : vector<1x128xi32>
    %271 = arith.andi %268, %270 : vector<1x128xi1>
    %272 = vector.extract_strided_slice %247 {offsets = [14, 0], sizes = [2, 128], strides = [1, 1]} : vector<16x128xf32> to vector<2x128xf32>
    %273 = vector.extract_strided_slice %247 {offsets = [12, 0], sizes = [2, 128], strides = [1, 1]} : vector<16x128xf32> to vector<2x128xf32>
    %274 = vector.extract_strided_slice %247 {offsets = [10, 0], sizes = [2, 128], strides = [1, 1]} : vector<16x128xf32> to vector<2x128xf32>
    %275 = vector.extract_strided_slice %247 {offsets = [8, 0], sizes = [2, 128], strides = [1, 1]} : vector<16x128xf32> to vector<2x128xf32>
    %276 = vector.extract_strided_slice %247 {offsets = [6, 0], sizes = [2, 128], strides = [1, 1]} : vector<16x128xf32> to vector<2x128xf32>
    %277 = vector.extract_strided_slice %247 {offsets = [4, 0], sizes = [2, 128], strides = [1, 1]} : vector<16x128xf32> to vector<2x128xf32>
    %278 = vector.extract_strided_slice %247 {offsets = [2, 0], sizes = [2, 128], strides = [1, 1]} : vector<16x128xf32> to vector<2x128xf32>
    %279 = vector.extract_strided_slice %247 {offsets = [0, 0], sizes = [2, 128], strides = [1, 1]} : vector<16x128xf32> to vector<2x128xf32>
    %280 = tpu.concatenate %272, %273, %274, %275, %276, %277, %278, %279 in 0 : vector<2x128xf32>, vector<2x128xf32>, vector<2x128xf32>, vector<2x128xf32>, vector<2x128xf32>, vector<2x128xf32>, vector<2x128xf32>, vector<2x128xf32> -> vector<16x128xf32>
    %281 = vector.shape_cast %266 : vector<1x128xi1> to vector<1x128xi1>
    %282 = vector.broadcast %281 : vector<1x128xi1> to vector<16x128xi1>
    %283 = arith.select %282, %247, %280 : vector<16x128xi1>, vector<16x128xf32>
    %cst_39 = arith.constant 0.000000e+00 : f32
    %284 = vector.broadcast %cst_39 : f32 to vector<2x32xf32>
    %cst_40 = arith.constant 0.000000e+00 : f32
    %285 = vector.broadcast %cst_40 : f32 to vector<2x32xf32>
    %286 = vector.extract_strided_slice %283 {offsets = [0, 0], sizes = [2, 128], strides = [1, 1]} : vector<16x128xf32> to vector<2x128xf32>
    %cst_41 = arith.constant dense<0.000000e+00> : vector<2x128xf32>
    %287 = tpu.matmul %284, %3, %cst_41 {dimension_numbers = #tpu.dot_dimension_numbers<[1], [0], [0], [1], [0, 0, 1, 1], [], []>} : vector<2x32xf32>, vector<32x128xf32>, vector<2x128xf32> -> vector<2x128xf32>
    %288 = arith.addf %286, %287 : vector<2x128xf32>
    %289 = math.tanh %288 : vector<2x128xf32>
    %290 = arith.negf %288 : vector<2x128xf32>
    %291 = math.exp %290 : vector<2x128xf32>
    %cst_42 = arith.constant 1.000000e+00 : f32
    %292 = vector.broadcast %cst_42 : f32 to vector<2x128xf32>
    %293 = arith.addf %292, %291 : vector<2x128xf32>
    %294 = arith.divf %292, %293 : vector<2x128xf32>
    %295 = vector.shape_cast %271 : vector<1x128xi1> to vector<1x128xi1>
    %296 = vector.broadcast %295 : vector<1x128xi1> to vector<2x128xi1>
    %297 = arith.select %296, %289, %294 : vector<2x128xi1>, vector<2x128xf32>
    %298 = vector.extract_strided_slice %297 {offsets = [0, 0], sizes = [2, 32], strides = [1, 1]} : vector<2x128xf32> to vector<2x32xf32>
    %299 = vector.extract_strided_slice %297 {offsets = [0, 32], sizes = [2, 32], strides = [1, 1]} : vector<2x128xf32> to vector<2x32xf32>
    %300 = vector.extract_strided_slice %297 {offsets = [0, 64], sizes = [2, 32], strides = [1, 1]} : vector<2x128xf32> to vector<2x32xf32>
    %301 = vector.extract_strided_slice %297 {offsets = [0, 96], sizes = [2, 32], strides = [1, 1]} : vector<2x128xf32> to vector<2x32xf32>
    %302 = arith.mulf %299, %285 : vector<2x32xf32>
    %303 = arith.mulf %298, %300 : vector<2x32xf32>
    %304 = arith.addf %302, %303 : vector<2x32xf32>
    %305 = math.tanh %304 : vector<2x32xf32>
    %306 = arith.mulf %301, %305 : vector<2x32xf32>
    %307 = vector.extract_strided_slice %283 {offsets = [2, 0], sizes = [2, 128], strides = [1, 1]} : vector<16x128xf32> to vector<2x128xf32>
    %cst_43 = arith.constant dense<0.000000e+00> : vector<2x128xf32>
    %308 = tpu.matmul %306, %3, %cst_43 {dimension_numbers = #tpu.dot_dimension_numbers<[1], [0], [0], [1], [0, 0, 1, 1], [], []>} : vector<2x32xf32>, vector<32x128xf32>, vector<2x128xf32> -> vector<2x128xf32>
    %309 = arith.addf %307, %308 : vector<2x128xf32>
    %310 = math.tanh %309 : vector<2x128xf32>
    %311 = arith.negf %309 : vector<2x128xf32>
    %312 = math.exp %311 : vector<2x128xf32>
    %cst_44 = arith.constant 1.000000e+00 : f32
    %313 = vector.broadcast %cst_44 : f32 to vector<2x128xf32>
    %314 = arith.addf %313, %312 : vector<2x128xf32>
    %315 = arith.divf %313, %314 : vector<2x128xf32>
    %316 = vector.shape_cast %271 : vector<1x128xi1> to vector<1x128xi1>
    %317 = vector.broadcast %316 : vector<1x128xi1> to vector<2x128xi1>
    %318 = arith.select %317, %310, %315 : vector<2x128xi1>, vector<2x128xf32>
    %319 = vector.extract_strided_slice %318 {offsets = [0, 0], sizes = [2, 32], strides = [1, 1]} : vector<2x128xf32> to vector<2x32xf32>
    %320 = vector.extract_strided_slice %318 {offsets = [0, 32], sizes = [2, 32], strides = [1, 1]} : vector<2x128xf32> to vector<2x32xf32>
    %321 = vector.extract_strided_slice %318 {offsets = [0, 64], sizes = [2, 32], strides = [1, 1]} : vector<2x128xf32> to vector<2x32xf32>
    %322 = vector.extract_strided_slice %318 {offsets = [0, 96], sizes = [2, 32], strides = [1, 1]} : vector<2x128xf32> to vector<2x32xf32>
    %323 = arith.mulf %320, %304 : vector<2x32xf32>
    %324 = arith.mulf %319, %321 : vector<2x32xf32>
    %325 = arith.addf %323, %324 : vector<2x32xf32>
    %326 = math.tanh %325 : vector<2x32xf32>
    %327 = arith.mulf %322, %326 : vector<2x32xf32>
    %328 = vector.extract_strided_slice %283 {offsets = [4, 0], sizes = [2, 128], strides = [1, 1]} : vector<16x128xf32> to vector<2x128xf32>
    %cst_45 = arith.constant dense<0.000000e+00> : vector<2x128xf32>
    %329 = tpu.matmul %327, %3, %cst_45 {dimension_numbers = #tpu.dot_dimension_numbers<[1], [0], [0], [1], [0, 0, 1, 1], [], []>} : vector<2x32xf32>, vector<32x128xf32>, vector<2x128xf32> -> vector<2x128xf32>
    %330 = arith.addf %328, %329 : vector<2x128xf32>
    %331 = math.tanh %330 : vector<2x128xf32>
    %332 = arith.negf %330 : vector<2x128xf32>
    %333 = math.exp %332 : vector<2x128xf32>
    %cst_46 = arith.constant 1.000000e+00 : f32
    %334 = vector.broadcast %cst_46 : f32 to vector<2x128xf32>
    %335 = arith.addf %334, %333 : vector<2x128xf32>
    %336 = arith.divf %334, %335 : vector<2x128xf32>
    %337 = vector.shape_cast %271 : vector<1x128xi1> to vector<1x128xi1>
    %338 = vector.broadcast %337 : vector<1x128xi1> to vector<2x128xi1>
    %339 = arith.select %338, %331, %336 : vector<2x128xi1>, vector<2x128xf32>
    %340 = vector.extract_strided_slice %339 {offsets = [0, 0], sizes = [2, 32], strides = [1, 1]} : vector<2x128xf32> to vector<2x32xf32>
    %341 = vector.extract_strided_slice %339 {offsets = [0, 32], sizes = [2, 32], strides = [1, 1]} : vector<2x128xf32> to vector<2x32xf32>
    %342 = vector.extract_strided_slice %339 {offsets = [0, 64], sizes = [2, 32], strides = [1, 1]} : vector<2x128xf32> to vector<2x32xf32>
    %343 = vector.extract_strided_slice %339 {offsets = [0, 96], sizes = [2, 32], strides = [1, 1]} : vector<2x128xf32> to vector<2x32xf32>
    %344 = arith.mulf %341, %325 : vector<2x32xf32>
    %345 = arith.mulf %340, %342 : vector<2x32xf32>
    %346 = arith.addf %344, %345 : vector<2x32xf32>
    %347 = math.tanh %346 : vector<2x32xf32>
    %348 = arith.mulf %343, %347 : vector<2x32xf32>
    %349 = vector.extract_strided_slice %283 {offsets = [6, 0], sizes = [2, 128], strides = [1, 1]} : vector<16x128xf32> to vector<2x128xf32>
    %cst_47 = arith.constant dense<0.000000e+00> : vector<2x128xf32>
    %350 = tpu.matmul %348, %3, %cst_47 {dimension_numbers = #tpu.dot_dimension_numbers<[1], [0], [0], [1], [0, 0, 1, 1], [], []>} : vector<2x32xf32>, vector<32x128xf32>, vector<2x128xf32> -> vector<2x128xf32>
    %351 = arith.addf %349, %350 : vector<2x128xf32>
    %352 = math.tanh %351 : vector<2x128xf32>
    %353 = arith.negf %351 : vector<2x128xf32>
    %354 = math.exp %353 : vector<2x128xf32>
    %cst_48 = arith.constant 1.000000e+00 : f32
    %355 = vector.broadcast %cst_48 : f32 to vector<2x128xf32>
    %356 = arith.addf %355, %354 : vector<2x128xf32>
    %357 = arith.divf %355, %356 : vector<2x128xf32>
    %358 = vector.shape_cast %271 : vector<1x128xi1> to vector<1x128xi1>
    %359 = vector.broadcast %358 : vector<1x128xi1> to vector<2x128xi1>
    %360 = arith.select %359, %352, %357 : vector<2x128xi1>, vector<2x128xf32>
    %361 = vector.extract_strided_slice %360 {offsets = [0, 0], sizes = [2, 32], strides = [1, 1]} : vector<2x128xf32> to vector<2x32xf32>
    %362 = vector.extract_strided_slice %360 {offsets = [0, 32], sizes = [2, 32], strides = [1, 1]} : vector<2x128xf32> to vector<2x32xf32>
    %363 = vector.extract_strided_slice %360 {offsets = [0, 64], sizes = [2, 32], strides = [1, 1]} : vector<2x128xf32> to vector<2x32xf32>
    %364 = vector.extract_strided_slice %360 {offsets = [0, 96], sizes = [2, 32], strides = [1, 1]} : vector<2x128xf32> to vector<2x32xf32>
    %365 = arith.mulf %362, %346 : vector<2x32xf32>
    %366 = arith.mulf %361, %363 : vector<2x32xf32>
    %367 = arith.addf %365, %366 : vector<2x32xf32>
    %368 = math.tanh %367 : vector<2x32xf32>
    %369 = arith.mulf %364, %368 : vector<2x32xf32>
    %370 = vector.extract_strided_slice %283 {offsets = [8, 0], sizes = [2, 128], strides = [1, 1]} : vector<16x128xf32> to vector<2x128xf32>
    %cst_49 = arith.constant dense<0.000000e+00> : vector<2x128xf32>
    %371 = tpu.matmul %369, %3, %cst_49 {dimension_numbers = #tpu.dot_dimension_numbers<[1], [0], [0], [1], [0, 0, 1, 1], [], []>} : vector<2x32xf32>, vector<32x128xf32>, vector<2x128xf32> -> vector<2x128xf32>
    %372 = arith.addf %370, %371 : vector<2x128xf32>
    %373 = math.tanh %372 : vector<2x128xf32>
    %374 = arith.negf %372 : vector<2x128xf32>
    %375 = math.exp %374 : vector<2x128xf32>
    %cst_50 = arith.constant 1.000000e+00 : f32
    %376 = vector.broadcast %cst_50 : f32 to vector<2x128xf32>
    %377 = arith.addf %376, %375 : vector<2x128xf32>
    %378 = arith.divf %376, %377 : vector<2x128xf32>
    %379 = vector.shape_cast %271 : vector<1x128xi1> to vector<1x128xi1>
    %380 = vector.broadcast %379 : vector<1x128xi1> to vector<2x128xi1>
    %381 = arith.select %380, %373, %378 : vector<2x128xi1>, vector<2x128xf32>
    %382 = vector.extract_strided_slice %381 {offsets = [0, 0], sizes = [2, 32], strides = [1, 1]} : vector<2x128xf32> to vector<2x32xf32>
    %383 = vector.extract_strided_slice %381 {offsets = [0, 32], sizes = [2, 32], strides = [1, 1]} : vector<2x128xf32> to vector<2x32xf32>
    %384 = vector.extract_strided_slice %381 {offsets = [0, 64], sizes = [2, 32], strides = [1, 1]} : vector<2x128xf32> to vector<2x32xf32>
    %385 = vector.extract_strided_slice %381 {offsets = [0, 96], sizes = [2, 32], strides = [1, 1]} : vector<2x128xf32> to vector<2x32xf32>
    %386 = arith.mulf %383, %367 : vector<2x32xf32>
    %387 = arith.mulf %382, %384 : vector<2x32xf32>
    %388 = arith.addf %386, %387 : vector<2x32xf32>
    %389 = math.tanh %388 : vector<2x32xf32>
    %390 = arith.mulf %385, %389 : vector<2x32xf32>
    %391 = vector.extract_strided_slice %283 {offsets = [10, 0], sizes = [2, 128], strides = [1, 1]} : vector<16x128xf32> to vector<2x128xf32>
    %cst_51 = arith.constant dense<0.000000e+00> : vector<2x128xf32>
    %392 = tpu.matmul %390, %3, %cst_51 {dimension_numbers = #tpu.dot_dimension_numbers<[1], [0], [0], [1], [0, 0, 1, 1], [], []>} : vector<2x32xf32>, vector<32x128xf32>, vector<2x128xf32> -> vector<2x128xf32>
    %393 = arith.addf %391, %392 : vector<2x128xf32>
    %394 = math.tanh %393 : vector<2x128xf32>
    %395 = arith.negf %393 : vector<2x128xf32>
    %396 = math.exp %395 : vector<2x128xf32>
    %cst_52 = arith.constant 1.000000e+00 : f32
    %397 = vector.broadcast %cst_52 : f32 to vector<2x128xf32>
    %398 = arith.addf %397, %396 : vector<2x128xf32>
    %399 = arith.divf %397, %398 : vector<2x128xf32>
    %400 = vector.shape_cast %271 : vector<1x128xi1> to vector<1x128xi1>
    %401 = vector.broadcast %400 : vector<1x128xi1> to vector<2x128xi1>
    %402 = arith.select %401, %394, %399 : vector<2x128xi1>, vector<2x128xf32>
    %403 = vector.extract_strided_slice %402 {offsets = [0, 0], sizes = [2, 32], strides = [1, 1]} : vector<2x128xf32> to vector<2x32xf32>
    %404 = vector.extract_strided_slice %402 {offsets = [0, 32], sizes = [2, 32], strides = [1, 1]} : vector<2x128xf32> to vector<2x32xf32>
    %405 = vector.extract_strided_slice %402 {offsets = [0, 64], sizes = [2, 32], strides = [1, 1]} : vector<2x128xf32> to vector<2x32xf32>
    %406 = vector.extract_strided_slice %402 {offsets = [0, 96], sizes = [2, 32], strides = [1, 1]} : vector<2x128xf32> to vector<2x32xf32>
    %407 = arith.mulf %404, %388 : vector<2x32xf32>
    %408 = arith.mulf %403, %405 : vector<2x32xf32>
    %409 = arith.addf %407, %408 : vector<2x32xf32>
    %410 = math.tanh %409 : vector<2x32xf32>
    %411 = arith.mulf %406, %410 : vector<2x32xf32>
    %412 = vector.extract_strided_slice %283 {offsets = [12, 0], sizes = [2, 128], strides = [1, 1]} : vector<16x128xf32> to vector<2x128xf32>
    %cst_53 = arith.constant dense<0.000000e+00> : vector<2x128xf32>
    %413 = tpu.matmul %411, %3, %cst_53 {dimension_numbers = #tpu.dot_dimension_numbers<[1], [0], [0], [1], [0, 0, 1, 1], [], []>} : vector<2x32xf32>, vector<32x128xf32>, vector<2x128xf32> -> vector<2x128xf32>
    %414 = arith.addf %412, %413 : vector<2x128xf32>
    %415 = math.tanh %414 : vector<2x128xf32>
    %416 = arith.negf %414 : vector<2x128xf32>
    %417 = math.exp %416 : vector<2x128xf32>
    %cst_54 = arith.constant 1.000000e+00 : f32
    %418 = vector.broadcast %cst_54 : f32 to vector<2x128xf32>
    %419 = arith.addf %418, %417 : vector<2x128xf32>
    %420 = arith.divf %418, %419 : vector<2x128xf32>
    %421 = vector.shape_cast %271 : vector<1x128xi1> to vector<1x128xi1>
    %422 = vector.broadcast %421 : vector<1x128xi1> to vector<2x128xi1>
    %423 = arith.select %422, %415, %420 : vector<2x128xi1>, vector<2x128xf32>
    %424 = vector.extract_strided_slice %423 {offsets = [0, 0], sizes = [2, 32], strides = [1, 1]} : vector<2x128xf32> to vector<2x32xf32>
    %425 = vector.extract_strided_slice %423 {offsets = [0, 32], sizes = [2, 32], strides = [1, 1]} : vector<2x128xf32> to vector<2x32xf32>
    %426 = vector.extract_strided_slice %423 {offsets = [0, 64], sizes = [2, 32], strides = [1, 1]} : vector<2x128xf32> to vector<2x32xf32>
    %427 = vector.extract_strided_slice %423 {offsets = [0, 96], sizes = [2, 32], strides = [1, 1]} : vector<2x128xf32> to vector<2x32xf32>
    %428 = arith.mulf %425, %409 : vector<2x32xf32>
    %429 = arith.mulf %424, %426 : vector<2x32xf32>
    %430 = arith.addf %428, %429 : vector<2x32xf32>
    %431 = math.tanh %430 : vector<2x32xf32>
    %432 = arith.mulf %427, %431 : vector<2x32xf32>
    %433 = vector.extract_strided_slice %283 {offsets = [14, 0], sizes = [2, 128], strides = [1, 1]} : vector<16x128xf32> to vector<2x128xf32>
    %cst_55 = arith.constant dense<0.000000e+00> : vector<2x128xf32>
    %434 = tpu.matmul %432, %3, %cst_55 {dimension_numbers = #tpu.dot_dimension_numbers<[1], [0], [0], [1], [0, 0, 1, 1], [], []>} : vector<2x32xf32>, vector<32x128xf32>, vector<2x128xf32> -> vector<2x128xf32>
    %435 = arith.addf %433, %434 : vector<2x128xf32>
    %436 = math.tanh %435 : vector<2x128xf32>
    %437 = arith.negf %435 : vector<2x128xf32>
    %438 = math.exp %437 : vector<2x128xf32>
    %cst_56 = arith.constant 1.000000e+00 : f32
    %439 = vector.broadcast %cst_56 : f32 to vector<2x128xf32>
    %440 = arith.addf %439, %438 : vector<2x128xf32>
    %441 = arith.divf %439, %440 : vector<2x128xf32>
    %442 = vector.shape_cast %271 : vector<1x128xi1> to vector<1x128xi1>
    %443 = vector.broadcast %442 : vector<1x128xi1> to vector<2x128xi1>
    %444 = arith.select %443, %436, %441 : vector<2x128xi1>, vector<2x128xf32>
    %445 = vector.extract_strided_slice %444 {offsets = [0, 0], sizes = [2, 32], strides = [1, 1]} : vector<2x128xf32> to vector<2x32xf32>
    %446 = vector.extract_strided_slice %444 {offsets = [0, 32], sizes = [2, 32], strides = [1, 1]} : vector<2x128xf32> to vector<2x32xf32>
    %447 = vector.extract_strided_slice %444 {offsets = [0, 64], sizes = [2, 32], strides = [1, 1]} : vector<2x128xf32> to vector<2x32xf32>
    %448 = vector.extract_strided_slice %444 {offsets = [0, 96], sizes = [2, 32], strides = [1, 1]} : vector<2x128xf32> to vector<2x32xf32>
    %449 = arith.mulf %446, %430 : vector<2x32xf32>
    %450 = arith.mulf %445, %447 : vector<2x32xf32>
    %451 = arith.addf %449, %450 : vector<2x32xf32>
    %452 = math.tanh %451 : vector<2x32xf32>
    %453 = arith.mulf %448, %452 : vector<2x32xf32>
    %454 = tpu.iota {dimensions = array<i32: 1>} : vector<1x32xi32>
    %c16_i32_57 = arith.constant 16 : i32
    %455 = vector.broadcast %c16_i32_57 : i32 to vector<1x32xi32>
    %456 = arith.cmpi slt, %454, %455 : vector<1x32xi32>
    %457 = vector.shape_cast %456 : vector<1x32xi1> to vector<1x32xi1>
    %458 = vector.broadcast %457 : vector<1x32xi1> to vector<2x32xi1>
    %459 = arith.select %458, %306, %453 : vector<2x32xi1>, vector<2x32xf32>
    %460 = vector.shape_cast %456 : vector<1x32xi1> to vector<1x32xi1>
    %461 = vector.broadcast %460 : vector<1x32xi1> to vector<2x32xi1>
    %462 = arith.select %461, %327, %432 : vector<2x32xi1>, vector<2x32xf32>
    %463 = vector.shape_cast %456 : vector<1x32xi1> to vector<1x32xi1>
    %464 = vector.broadcast %463 : vector<1x32xi1> to vector<2x32xi1>
    %465 = arith.select %464, %348, %411 : vector<2x32xi1>, vector<2x32xf32>
    %466 = vector.shape_cast %456 : vector<1x32xi1> to vector<1x32xi1>
    %467 = vector.broadcast %466 : vector<1x32xi1> to vector<2x32xi1>
    %468 = arith.select %467, %369, %390 : vector<2x32xi1>, vector<2x32xf32>
    %469 = vector.shape_cast %456 : vector<1x32xi1> to vector<1x32xi1>
    %470 = vector.broadcast %469 : vector<1x32xi1> to vector<2x32xi1>
    %471 = arith.select %470, %390, %369 : vector<2x32xi1>, vector<2x32xf32>
    %472 = vector.shape_cast %456 : vector<1x32xi1> to vector<1x32xi1>
    %473 = vector.broadcast %472 : vector<1x32xi1> to vector<2x32xi1>
    %474 = arith.select %473, %411, %348 : vector<2x32xi1>, vector<2x32xf32>
    %475 = vector.shape_cast %456 : vector<1x32xi1> to vector<1x32xi1>
    %476 = vector.broadcast %475 : vector<1x32xi1> to vector<2x32xi1>
    %477 = arith.select %476, %432, %327 : vector<2x32xi1>, vector<2x32xf32>
    %478 = vector.shape_cast %456 : vector<1x32xi1> to vector<1x32xi1>
    %479 = vector.broadcast %478 : vector<1x32xi1> to vector<2x32xi1>
    %480 = arith.select %479, %453, %306 : vector<2x32xi1>, vector<2x32xf32>
    %481 = tpu.concatenate %459, %462, %465, %468, %471, %474, %477, %480 in 0 : vector<2x32xf32>, vector<2x32xf32>, vector<2x32xf32>, vector<2x32xf32>, vector<2x32xf32>, vector<2x32xf32>, vector<2x32xf32>, vector<2x32xf32> -> vector<16x32xf32>
    %c0_58 = arith.constant 0 : index
    %c0_59 = arith.constant 0 : index
    %482 = vector.load %arg2[%c0_58, %c0_59] : memref<16x32xf32, #tpu.memory_space<vmem>>, vector<16x32xf32>
    tpu.vector_store %arg2[%c0_58, %c0_59], %481 {strides = array<i32>} : memref<16x32xf32, #tpu.memory_space<vmem>>, vector<16x32xf32>,
    return
  }
}

</mosaic_0001>

<bundles_post_ra>
// kernel: recurrent_layer_forward.1
= control target key start
LH: loop header
LB: loop body
LE: loop exit
PB: predicated region body
PF: predicated region fallthrough
CT: control target
= control target key end

     0   :  { %vm35_vm0 = vcmask 261120   ;;  %v2665_v6 = vmov 0.0|0.0   ;;  %vm2666_vm1 = vmmov 0   ;;  %v2667_v11 = vmov 0.0   ;;  %s3149_s0 = inlined_call_operand.vmem [shape: f32[16,32], index: 0, kind: input, shape index: {}]   ;;  %s3150_s1 = inlined_call_operand.vmem [shape: f32[136,128], index: 1, kind: input, shape index: {}]   ;;  %s3151_s2 = inlined_call_operand.hbm [shape: f32[16,32], index: 2, kind: output, shape index: {}]  }
   0x1   :  { %v12_v0 = vld [vmem:[%s3150_s1] sm:$0xff]  ;;  %v13_v1 = vld [vmem:[%s3150_s1 + $0x8] sm:$0xff]  ;;  %v14_v2 = vld [vmem:[%s3150_s1 + $0x10] sm:$0xff]  ;;  %2401 = vmatprep.subr.bf16.mxu1 %v2665_v6  ;;  %2214 = vmatprep.mubr.msk.f32.mxu1 %vm2666_vm1, %v2667_v11 }
   0x2   :  { %v2393_v3 = vpack.c.bf16 %v13_v1, %v12_v0  ;;  %v15_v4 = vld [vmem:[%s3150_s1 + $0x18] sm:$0xff]  ;;  %v29_v5 = vld [vmem:[%s3149_s0] sm:$0xff]  ;;  %v17_v9 = vld [vmem:[%s3150_s1 + $0x28] sm:$0xff] }
   0x3   :  { %v2397_v7 = vpack.c.bf16 %v15_v4, %v14_v2  ;;  %2203 = vmatprep.mubr.msk.f32.mxu0 %vm35_vm0, %v29_v5  ;;  %v16_v8 = vld [vmem:[%s3150_s1 + $0x20] sm:$0xff]  ;;  %v18_v10 = vld [vmem:[%s3150_s1 + $0x30] sm:$0xff]  ;;  %v19_v13 = vld [vmem:[%s3150_s1 + $0x38] sm:$0xff] }
   0x4   :  { %2394 = vmatprep.subr.bf16.mxu0 %v2393_v3  ;;  %v2716_v12 = vpack.c.bf16 %v17_v9, %v16_v8 }
   0x5   :  { %7 = vsyncpa [#allocation3], 0  ;;  %2396 = vmatpush3.bf16.msra.mxu0 %v2393_v3  ;;  %v2722_v14 = vpack.c.bf16 %v19_v13, %v18_v10  ;;  %v30_v15 = vld [vmem:[%s3149_s0 + $0x8] sm:$0xff]  ;;  %v31_v16 = vlaneseq  ;;  %v2751_v19 = vld [vmem:[%s3150_s1 + $0x80] sm:$0xff]  ;;  %vm145_vm2 = vcmask 1041408   ;;  %vm147_vm3 = vcmask 1043456  }
   0x6   :  { %2398 = vmatprep.subr.bf16.mxu0 %v2397_v7  ;;  %2403 = vmatpush3.bf16.msra.mxu1 %v2716_v12  ;;  %vm149_vm4 = vcmask 1045504   ;;  %s2668_s30 = smov 64   ;;  %s2669_s3 = smov 32  }
   0x7   :  { %2404 = vmatprep.subr.bf16.mxu1 %v2665_v6  ;;  %v2745_v17 = vshrl.u32 %v31_v16, 7  ;;  %v2754_v21 = vand.u32 127, %v31_v16 }
   0x9   :  { %2400 = vmatpush3.bf16.msra.mxu0 %v2397_v7  ;;  %v33_v18 = vsub.s32 0, %v2745_v17  ;;  %v123_v25 = vand.u32 31, %v2754_v21  ;;  %vm132_vm6 = vcmp.ge.s32.totalorder %v2754_v21, 64  ;;  %vm133_vm7 = vcmp.lt.s32.totalorder %v2754_v21, 96 }
   0xa   :  { %2406 = vmatpush3.bf16.msra.mxu1 %v2722_v14  ;;  %2407 = vmatprep.subr.bf16.mxu0 %v2665_v6  ;;  %vm2778_vm8 = vmand %vm132_vm6, %vm133_vm7  ;;  %vm1010_vm9 = vcmp.lt.s32.totalorder %v2754_v21, 16 }
   0xb   :  { %2413 = vmatprep.subr.bf16.mxu1 %v2665_v6  ;;  %v34_v20 = vrot.slane %v2751_v19, %v33_v18  ;;  %vm2758_vm5 = vcmp.lt.s32.totalorder %v123_v25, 16 }
   0xc   :  { %2204 = vmatmul.mubr.msk.f32.vlgmr.msra.gmra.mrb[0].mxu0 %vm35_vm0, %v30_v15 }
   0xd   :  { %2215 = vmatmul.mubr.f32.vlgmr.msra.gmra.mrb[0].mxu1 %v2667_v11  ;;  %2409 = vmatpush3.bf16.msra.mxu0 %v2716_v12 }
   0xe   :  { %2410 = vmatprep.subr.bf16.mxu0 %v2665_v6  ;;  %2225 = vmatprep.mubr.msk.f32.mxu0 %vm2666_vm1, %v2667_v11 }
   0xf   :  { %2415 = vmatpush3.bf16.msra.mxu1 %v2716_v12  ;;  %2236 = vmatprep.mubr.msk.f32.mxu1 %vm2666_vm1, %v2667_v11 }
  0x10   :  { %2416 = vmatprep.subr.bf16.mxu1 %v2665_v6 }
  0x11   :  { %2412 = vmatpush3.bf16.msra.mxu0 %v2722_v14 }
  0x12   :  { %2419 = vmatprep.subr.bf16.mxu0 %v2665_v6 }
  0x13   :  { %2418 = vmatpush3.bf16.msra.mxu1 %v2722_v14 }
  0x14   :  { %2425 = vmatprep.subr.bf16.mxu1 %v2665_v6 }
  0xdf   :  { %v2205_v22 = vpop.f32.mrb[0].mxu0 }
  0xe0   :  { %v114_v23 = vadd.f32 %v2205_v22, %v34_v20  ;;  %v108_v24 = vpop.f32.mrb[1].mxu0  ;;  %v227_v26 = vpop.f32.mrb[0].mxu1 }
  0xe1   :  { %v109_v27 = vadd.f32 %v108_v24, %v34_v20  ;;  %v2216_v28 = vpop.f32.mrb[1].mxu1 }
  0xe2   :  { %v136_v29 = vrot.slane %v114_v23, 6  ;;  %v138_v30 = vrot.slane %v114_v23, 2 }
  0xe3   :  { %v141_v31 = vrot.slane %v109_v27, 6  ;;  %v143_v32 = vrot.slane %v109_v27, 2 }
  0xe4   :  { %v146_v33 = vsel %vm145_vm2, %v136_v29, %v138_v30 }
  0xe5   :  { %v151_v35 = vsel %vm145_vm2, %v141_v31, %v143_v32  ;;  %v148_v36 = vsel %vm147_vm3, %v146_v33, %v136_v29 }
  0xe6   :  { %v150_v37 = vsel %vm149_vm4, %v148_v36, %v138_v30  ;;  %v152_v38 = vsel %vm147_vm3, %v151_v35, %v141_v31 }
  0xe7   :  { %v2768_v39 = vsel %vm2758_vm5, %v109_v27, %v150_v37  ;;  %v153_v40 = vsel %vm149_vm4, %v152_v38, %v143_v32 }
  0xe8   :  { %v231_v41 = vadd.f32 %v227_v26, %v2768_v39  ;;  %v2774_v42 = vsel %vm2758_vm5, %v114_v23, %v153_v40 }
  0xea   :  { %v2071_v43 = vmul.f32 -1.442695, %v231_v41 }
  0xec   :  { %2513 = vpow2.f32 %v2071_v43 }
  0xed   :  { %2515 = vtanh.f32 %v231_v41 }
  0xf6   :  { %v2514_v44 = vpop.eup %2513 }
  0xf7   :  { %v236_v45 = vadd.f32 1.0, %v2514_v44  ;;  %v2516_v47 = vpop.eup %2515 }
  0xf9   :  { %2517 = vrcp.f32 %v236_v45 }
 0x103   :  { %v2518_v48 = vpop.eup %2517 }
 0x104   :  { %v241_v49 = vsel %vm2778_vm8, %v2516_v47, %v2518_v48 }
 0x105   :  { %244 = vrot.lane.b32.xlu0 %v241_v49, %s2668_s30  ;;  %v242_v52 = vmul.f32 0.0, %v241_v49 }
 0x177   :  { %v245_v50 = vpop.permute.xlu0 %244 }
 0x178   :  { %v247_v51 = vmul.f32 %v245_v50, %v241_v49 }
 0x17a   :  { %249 = vrot.lane.b32.xlu0 %v247_v51, %s2669_s3 }
 0x1ec   :  { %v250_v53 = vpop.permute.xlu0 %249 }
 0x1ed   :  { %v252_v54 = vadd.f32 %v250_v53, %v242_v52 }
 0x1ef   :  { %2519 = vtanh.f32 %v252_v54  ;;  %v347_v8 = vrot.slane %v252_v54, 6 }
 0x1f9   :  { %v2520_v55 = vpop.eup %2519 }
 0x1fa   :  { %255 = vrot.lane.b32.xlu1 %v2520_v55, %s2668_s30 }
 0x26c   :  { %v256_v56 = vpop.permute.xlu1 %255 }
 0x26d   :  { %v258_v57 = vmul.f32 %v256_v56, %v241_v49 }
 0x26f   :  { %260 = vrot.lane.b32.xlu1 %v258_v57, %s2669_s3 }
 0x2e1   :  { %v2788_v58 = vpop.permute.xlu1 %260 }
 0x2e2   :  { %2226 = vmatmul.mubr.msk.f32.vlgmr.msra.gmra.mrb[2].mxu0 %vm35_vm0, %v2788_v58 }
 0x2e3   :  { %2421 = vmatpush3.bf16.msra.mxu0 %v2716_v12  ;;  %2247 = vmatprep.mubr.msk.f32.mxu0 %vm2666_vm1, %v2667_v11 }
 0x2e4   :  { %2422 = vmatprep.subr.bf16.mxu0 %v2665_v6 }
 0x2e7   :  { %2424 = vmatpush3.bf16.msra.mxu0 %v2722_v14 }
 0x2e8   :  { %2431 = vmatprep.subr.bf16.mxu0 %v2665_v6 }
 0x3b5   :  { %v330_v59 = vpop.f32.mrb[2].mxu0 }
 0x3b6   :  { %v335_v60 = vrot.slane %v330_v59, 6  ;;  %v2227_v61 = vpop.f32.mrb[3].mxu0 }
 0x3b8   :  { %v337_v62 = vadd.f32 %v335_v60, %v2768_v39 }
 0x3ba   :  { %v2073_v63 = vmul.f32 -1.442695, %v337_v62 }
 0x3bc   :  { %2521 = vpow2.f32 %v2073_v63 }
 0x3bd   :  { %2523 = vtanh.f32 %v337_v62 }
 0x3c6   :  { %v2522_v0 = vpop.eup %2521 }
 0x3c7   :  { %v342_v1 = vadd.f32 1.0, %v2522_v0  ;;  %v2524_v2 = vpop.eup %2523 }
 0x3c9   :  { %2525 = vrcp.f32 %v342_v1 }
 0x3d3   :  { %v2526_v3 = vpop.eup %2525 }
 0x3d4   :  { %v345_v4 = vsel %vm2778_vm8, %v2524_v2, %v2526_v3 }
 0x3d5   :  { %351 = vrot.lane.b32.xlu0 %v345_v4, %s2668_s30  ;;  %v349_v9 = vmul.f32 %v347_v8, %v345_v4 }
 0x447   :  { %v352_v5 = vpop.permute.xlu0 %351 }
 0x448   :  { %v354_v7 = vmul.f32 %v352_v5, %v345_v4 }
 0x44a   :  { %356 = vrot.lane.b32.xlu1 %v354_v7, %s2669_s3 }
 0x4bc   :  { %v357_v10 = vpop.permute.xlu1 %356 }
 0x4bd   :  { %v359_v13 = vadd.f32 %v357_v10, %v349_v9 }
 0x4bf   :  { %2527 = vtanh.f32 %v359_v13  ;;  %v455_v36 = vrot.slane %v359_v13, 6 }
 0x4c9   :  { %v2528_v15 = vpop.eup %2527 }
 0x4ca   :  { %362 = vrot.lane.b32.xlu0 %v2528_v15, %s2668_s30 }
 0x53c   :  { %v363_v16 = vpop.permute.xlu0 %362 }
 0x53d   :  { %v365_v18 = vmul.f32 %v363_v16, %v345_v4 }
 0x53f   :  { %v367_v20 = vrot.slane %v365_v18, 2 }
 0x541   :  { %368 = vrot.lane.b32.xlu1 %v367_v20, %s2669_s3 }
 0x5b3   :  { %v2805_v22 = vpop.permute.xlu1 %368 }
 0x5b4   :  { %2237 = vmatmul.mubr.msk.f32.vlgmr.msra.gmra.mrb[2].mxu1 %vm35_vm0, %v2805_v22 }
 0x5b5   :  { %2427 = vmatpush3.bf16.msra.mxu1 %v2716_v12  ;;  %2258 = vmatprep.mubr.msk.f32.mxu1 %vm2666_vm1, %v2667_v11 }
 0x5b6   :  { %2428 = vmatprep.subr.bf16.mxu1 %v2665_v6 }
 0x5b9   :  { %2430 = vmatpush3.bf16.msra.mxu1 %v2722_v14 }
 0x5ba   :  { %2437 = vmatprep.subr.bf16.mxu1 %v2665_v6 }
 0x687   :  { %v438_v23 = vpop.f32.mrb[2].mxu1 }
 0x688   :  { %v443_v24 = vrot.slane %v438_v23, 4  ;;  %v2238_v25 = vpop.f32.mrb[3].mxu1 }
 0x68a   :  { %v445_v26 = vadd.f32 %v443_v24, %v2768_v39 }
 0x68c   :  { %v2075_v27 = vmul.f32 -1.442695, %v445_v26 }
 0x68e   :  { %2529 = vpow2.f32 %v2075_v27 }
 0x68f   :  { %2531 = vtanh.f32 %v445_v26 }
 0x698   :  { %v2530_v28 = vpop.eup %2529 }
 0x699   :  { %v450_v29 = vadd.f32 1.0, %v2530_v28  ;;  %v2532_v30 = vpop.eup %2531 }
 0x69b   :  { %2533 = vrcp.f32 %v450_v29 }
 0x6a5   :  { %v2534_v31 = vpop.eup %2533 }
 0x6a6   :  { %v453_v32 = vsel %vm2778_vm8, %v2532_v30, %v2534_v31 }
 0x6a7   :  { %459 = vrot.lane.b32.xlu0 %v453_v32, %s2668_s30  ;;  %v457_v37 = vmul.f32 %v455_v36, %v453_v32 }
 0x719   :  { %v460_v33 = vpop.permute.xlu0 %459 }
 0x71a   :  { %v462_v35 = vmul.f32 %v460_v33, %v453_v32 }
 0x71c   :  { %464 = vrot.lane.b32.xlu1 %v462_v35, %s2669_s3 }
 0x78e   :  { %v465_v38 = vpop.permute.xlu1 %464 }
 0x78f   :  { %v467_v40 = vadd.f32 %v465_v38, %v457_v37 }
 0x791   :  { %2535 = vtanh.f32 %v467_v40  ;;  %v563_v61 = vrot.slane %v467_v40, 6 }
 0x79b   :  { %v2536_v41 = vpop.eup %2535 }
 0x79c   :  { %470 = vrot.lane.b32.xlu0 %v2536_v41, %s2668_s30 }
 0x80e   :  { %v471_v43 = vpop.permute.xlu0 %470 }
 0x80f   :  { %v473_v44 = vmul.f32 %v471_v43, %v453_v32 }
 0x811   :  { %v475_v45 = vrot.slane %v473_v44, 4 }
 0x813   :  { %476 = vrot.lane.b32.xlu1 %v475_v45, %s2669_s3 }
 0x885   :  { %v2822_v47 = vpop.permute.xlu1 %476 }
 0x886   :  { %2248 = vmatmul.mubr.msk.f32.vlgmr.msra.gmra.mrb[4].mxu0 %vm35_vm0, %v2822_v47 }
 0x887   :  { %2433 = vmatpush3.bf16.msra.mxu0 %v2716_v12  ;;  %2269 = vmatprep.mubr.msk.f32.mxu0 %vm2666_vm1, %v2667_v11 }
 0x888   :  { %2434 = vmatprep.subr.bf16.mxu0 %v2665_v6 }
 0x88b   :  { %2436 = vmatpush3.bf16.msra.mxu0 %v2722_v14 }
 0x88c   :  { %2443 = vmatprep.subr.bf16.mxu0 %v2665_v6 }
 0x959   :  { %v546_v48 = vpop.f32.mrb[4].mxu0 }
 0x95a   :  { %v551_v49 = vrot.slane %v546_v48, 2  ;;  %v2249_v50 = vpop.f32.mrb[5].mxu0 }
 0x95c   :  { %v553_v51 = vadd.f32 %v551_v49, %v2768_v39 }
 0x95e   :  { %v2077_v52 = vmul.f32 -1.442695, %v553_v51 }
 0x960   :  { %2537 = vpow2.f32 %v2077_v52 }
 0x961   :  { %2539 = vtanh.f32 %v553_v51 }
 0x96a   :  { %v2538_v53 = vpop.eup %2537 }
 0x96b   :  { %v558_v54 = vadd.f32 1.0, %v2538_v53  ;;  %v2540_v55 = vpop.eup %2539 }
 0x96d   :  { %2541 = vrcp.f32 %v558_v54 }
 0x977   :  { %v2542_v56 = vpop.eup %2541 }
 0x978   :  { %v561_v57 = vsel %vm2778_vm8, %v2540_v55, %v2542_v56 }
 0x979   :  { %567 = vrot.lane.b32.xlu0 %v561_v57, %s2668_s30  ;;  %v565_v62 = vmul.f32 %v563_v61, %v561_v57 }
 0x9eb   :  { %v568_v59 = vpop.permute.xlu0 %567 }
 0x9ec   :  { %v570_v60 = vmul.f32 %v568_v59, %v561_v57 }
 0x9ee   :  { %572 = vrot.lane.b32.xlu1 %v570_v60, %s2669_s3 }
 0xa60   :  { %v573_v39 = vpop.permute.xlu1 %572 }
 0xa61   :  { %v575_v63 = vadd.f32 %v573_v39, %v565_v62 }
 0xa63   :  { %2543 = vtanh.f32 %v575_v63  ;;  %v668_v24 = vrot.slane %v575_v63, 6 }
 0xa6d   :  { %v2544_v0 = vpop.eup %2543 }
 0xa6e   :  { %578 = vrot.lane.b32.xlu0 %v2544_v0, %s2668_s30 }
 0xae0   :  { %v579_v1 = vpop.permute.xlu0 %578 }
 0xae1   :  { %v581_v2 = vmul.f32 %v579_v1, %v561_v57 }
 0xae3   :  { %v583_v3 = vrot.slane %v581_v2, 6 }
 0xae5   :  { %584 = vrot.lane.b32.xlu1 %v583_v3, %s2669_s3 }
 0xb57   :  { %v2839_v4 = vpop.permute.xlu1 %584 }
 0xb58   :  { %2259 = vmatmul.mubr.msk.f32.vlgmr.msra.gmra.mrb[4].mxu1 %vm35_vm0, %v2839_v4 }
 0xb59   :  { %2439 = vmatpush3.bf16.msra.mxu1 %v2716_v12  ;;  %2280 = vmatprep.mubr.msk.f32.mxu1 %vm2666_vm1, %v2667_v11 }
 0xb5a   :  { %2440 = vmatprep.subr.bf16.mxu1 %v2665_v6 }
 0xb5d   :  { %2442 = vmatpush3.bf16.msra.mxu1 %v2722_v14 }
 0xc2b   :  { %v654_v5 = vpop.f32.mrb[4].mxu1 }
 0xc2c   :  { %v658_v7 = vadd.f32 %v654_v5, %v2774_v42  ;;  %v2260_v8 = vpop.f32.mrb[5].mxu1 }
 0xc2e   :  { %v2079_v9 = vmul.f32 -1.442695, %v658_v7 }
 0xc30   :  { %2545 = vpow2.f32 %v2079_v9 }
 0xc31   :  { %2547 = vtanh.f32 %v658_v7 }
 0xc3a   :  { %v2546_v10 = vpop.eup %2545 }
 0xc3b   :  { %v663_v13 = vadd.f32 1.0, %v2546_v10  ;;  %v2548_v15 = vpop.eup %2547 }
 0xc3d   :  { %2549 = vrcp.f32 %v663_v13 }
 0xc47   :  { %v2550_v16 = vpop.eup %2549 }
 0xc48   :  { %v666_v18 = vsel %vm2778_vm8, %v2548_v15, %v2550_v16 }
 0xc49   :  { %672 = vrot.lane.b32.xlu0 %v666_v18, %s2668_s30  ;;  %v670_v25 = vmul.f32 %v668_v24, %v666_v18 }
 0xcbb   :  { %v673_v20 = vpop.permute.xlu0 %672 }
 0xcbc   :  { %v675_v23 = vmul.f32 %v673_v20, %v666_v18 }
 0xcbe   :  { %677 = vrot.lane.b32.xlu1 %v675_v23, %s2669_s3 }
 0xd30   :  { %v678_v26 = vpop.permute.xlu1 %677 }
 0xd31   :  { %v680_v27 = vadd.f32 %v678_v26, %v670_v25 }
 0xd33   :  { %2551 = vtanh.f32 %v680_v27  ;;  %v775_v45 = vrot.slane %v680_v27, 6 }
 0xd3d   :  { %v2552_v28 = vpop.eup %2551 }
 0xd3e   :  { %683 = vrot.lane.b32.xlu0 %v2552_v28, %s2668_s30 }
 0xdb0   :  { %v684_v29 = vpop.permute.xlu0 %683 }
 0xdb1   :  { %v686_v30 = vmul.f32 %v684_v29, %v666_v18 }
 0xdb3   :  { %688 = vrot.lane.b32.xlu1 %v686_v30, %s2669_s3 }
 0xe25   :  { %v2855_v31 = vpop.permute.xlu1 %688 }
 0xe26   :  { %2270 = vmatmul.mubr.msk.f32.vlgmr.msra.gmra.mrb[6].mxu0 %vm35_vm0, %v2855_v31 }
 0xe27   :  { %2445 = vmatpush3.bf16.msra.mxu0 %v2716_v12  ;;  %2291 = vmatprep.mubr.msk.f32.mxu0 %vm2666_vm1, %v2667_v11 }
 0xe28   :  { %2446 = vmatprep.subr.bf16.mxu0 %v2665_v6 }
 0xe2b   :  { %2448 = vmatpush3.bf16.msra.mxu0 %v2722_v14 }
 0xe2c   :  { %2457 = vmatprep.subr.bf16.mxu0 %v2665_v6 }
 0xef9   :  { %v758_v32 = vpop.f32.mrb[6].mxu0 }
 0xefa   :  { %v763_v33 = vrot.slane %v758_v32, 6  ;;  %v2271_v35 = vpop.f32.mrb[7].mxu0 }
 0xefc   :  { %v765_v36 = vadd.f32 %v763_v33, %v2774_v42 }
 0xefe   :  { %v2081_v37 = vmul.f32 -1.442695, %v765_v36 }
 0xf00   :  { %2553 = vpow2.f32 %v2081_v37 }
 0xf01   :  { %2555 = vtanh.f32 %v765_v36 }
 0xf0a   :  { %v2554_v38 = vpop.eup %2553 }
 0xf0b   :  { %v770_v40 = vadd.f32 1.0, %v2554_v38  ;;  %v2556_v12 = vpop.eup %2555 }
 0xf0d   :  { %2557 = vrcp.f32 %v770_v40  ;;  %v20_v40 = vld [vmem:[%s3150_s1 + $0x40] sm:$0xff] }
 0xf17   :  { %v2558_v41 = vpop.eup %2557 }
 0xf18   :  { %v773_v43 = vsel %vm2778_vm8, %v2556_v12, %v2558_v41  ;;  %v21_v12 = vld [vmem:[%s3150_s1 + $0x48] sm:$0xff] }
 0xf19   :  { %779 = vrot.lane.b32.xlu0 %v773_v43, %s2668_s30  ;;  %v777_v48 = vmul.f32 %v775_v45, %v773_v43  ;;  %v2449_v41 = vpack.c.bf16 %v21_v12, %v20_v40 }
 0xf1b   :  { %2450 = vmatprep.subr.bf16.mxu1 %v2449_v41 }
 0xf8b   :  { %v780_v14 = vpop.permute.xlu0 %779 }
 0xf8c   :  { %v782_v44 = vmul.f32 %v780_v14, %v773_v43  ;;  %v22_v14 = vld [vmem:[%s3150_s1 + $0x50] sm:$0xff] }
 0xf8e   :  { %784 = vrot.lane.b32.xlu1 %v782_v44, %s2669_s3  ;;  %v23_v44 = vld [vmem:[%s3150_s1 + $0x58] sm:$0xff] }
 0xf8f   :  { %v2453_v45 = vpack.c.bf16 %v23_v44, %v22_v14 }
0x1000   :  { %v785_v49 = vpop.permute.xlu1 %784 }
0x1001   :  { %v787_v50 = vadd.f32 %v785_v49, %v777_v48  ;;  %v24_v48 = vld [vmem:[%s3150_s1 + $0x60] sm:$0xff]  ;;  %v25_v49 = vld [vmem:[%s3150_s1 + $0x68] sm:$0xff] }
0x1003   :  { %2559 = vtanh.f32 %v787_v50  ;;  %v883_v5 = vrot.slane %v787_v50, 6  ;;  %v2910_v50 = vpack.c.bf16 %v25_v49, %v24_v48 }
0x100d   :  { %v2560_v51 = vpop.eup %2559 }
0x100e   :  { %790 = vrot.lane.b32.xlu0 %v2560_v51, %s2668_s30  ;;  %v26_v51 = vld [vmem:[%s3150_s1 + $0x70] sm:$0xff] }
0x1080   :  { %v791_v52 = vpop.permute.xlu0 %790 }
0x1081   :  { %v793_v53 = vmul.f32 %v791_v52, %v773_v43  ;;  %v27_v52 = vld [vmem:[%s3150_s1 + $0x78] sm:$0xff]  ;;  %s2670_s1 = smov [#allocation2]  }
0x1082   :  { %s2058_s20 = sshll.u32 %s2670_s1, 4  ;;  %s2059_s20 = int_to_ptr.vmem [resolvable:$true] %s2058_s20 }
0x1083   :  { %v795_v54 = vrot.slane %v793_v53, 2  ;;  %v2921_v53 = vpack.c.bf16 %v27_v52, %v26_v51  ;;  %s2641_s21 = scalar_lea.vmem %s2059_s20, 256  ;;  %p2646_p1 = scmp.lt.s32.totalorder %s2059_s20, %s2059_s20 }
0x1084   :  { %p2642_p0 = scmp.ne.s32.totalorder %s2059_s20, %s2641_s21  ;;  %p2647_p2 = scmp.lt.s32.totalorder %s2641_s21, %s2641_s21 }
0x1085   :  { %796 = vrot.lane.b32.xlu1 %v795_v54, %s2669_s3 }
0x1086   :  { %p2648_p3 = por %p2647_p2, %p2646_p1 }
0x1088   :  { %p2649_p4 = pnand %p2648_p3, %p2642_p0 }
0x10f7   :  { %v2872_v55 = vpop.permute.xlu1 %796 }
0x10f8   :  { %2281 = vmatmul.mubr.msk.f32.vlgmr.msra.gmra.mrb[6].mxu1 %vm35_vm0, %v2872_v55 }
0x10f9   :  { %2452 = vmatpush3.bf16.msra.mxu1 %v2449_v41 }
0x10fa   :  { %2454 = vmatprep.subr.bf16.mxu1 %v2453_v45 }
0x10fd   :  { %2456 = vmatpush3.bf16.msra.mxu1 %v2453_v45 }
0x10fe   :  { %2463 = vmatprep.subr.bf16.mxu1 %v2665_v6 }
0x11cb   :  { %v866_v56 = vpop.f32.mrb[6].mxu1 }
0x11cc   :  { %v871_v57 = vrot.slane %v866_v56, 4  ;;  %v2282_v59 = vpop.f32.mrb[7].mxu1 }
0x11cd   :  { %v1030_v59 = vsel %vm1010_vm9, %v2872_v55, %v2822_v47 }
0x11ce   :  { %v873_v60 = vadd.f32 %v871_v57, %v2774_v42 }
0x11d0   :  { %v2083_v61 = vmul.f32 -1.442695, %v873_v60 }
0x11d2   :  { %2561 = vpow2.f32 %v2083_v61 }
0x11d3   :  { %2563 = vtanh.f32 %v873_v60 }
0x11dc   :  { %v2562_v62 = vpop.eup %2561 }
0x11dd   :  { %v878_v39 = vadd.f32 1.0, %v2562_v62  ;;  %v2564_v63 = vpop.eup %2563  ;;  %v1025_v62 = vsel %vm1010_vm9, %v2822_v47, %v2872_v55 }
0x11df   :  { %2565 = vrcp.f32 %v878_v39  ;;  %v1043_v39 = vrot.slane %v1030_v59, 6 }
0x11e9   :  { %v2566_v0 = vpop.eup %2565 }
0x11ea   :  { %v881_v1 = vsel %vm2778_vm8, %v2564_v63, %v2566_v0  ;;  %v1028_v63 = vsel %vm1010_vm9, %v2839_v4, %v2855_v31 }
0x11eb   :  { %887 = vrot.lane.b32.xlu0 %v881_v1, %s2668_s30  ;;  %v885_v7 = vmul.f32 %v883_v5, %v881_v1  ;;  %v1040_v55 = vrot.slane %v1028_v63, 2 }
0x125d   :  { %v888_v2 = vpop.permute.xlu0 %887 }
0x125e   :  { %v890_v3 = vmul.f32 %v888_v2, %v881_v1 }
0x1260   :  { %892 = vrot.lane.b32.xlu1 %v890_v3, %s2669_s3  ;;  %v1029_v3 = vsel %vm1010_vm9, %v2855_v31, %v2839_v4 }
0x12d2   :  { %v893_v8 = vpop.permute.xlu1 %892 }
0x12d3   :  { %v895_v9 = vadd.f32 %v893_v8, %v885_v7  ;;  %v1054_v7 = vsel %vm145_vm2, %v1029_v3, %v1043_v39 }
0x12d5   :  { %2567 = vtanh.f32 %v895_v9  ;;  %v991_v36 = vrot.slane %v895_v9, 6 }
0x12df   :  { %v2568_v10 = vpop.eup %2567 }
0x12e0   :  { %898 = vrot.lane.b32.xlu0 %v2568_v10, %s2668_s30 }
0x1352   :  { %v899_v13 = vpop.permute.xlu0 %898 }
0x1353   :  { %v901_v15 = vmul.f32 %v899_v13, %v881_v1 }
0x1355   :  { %v903_v16 = vrot.slane %v901_v15, 4 }
0x1357   :  { %904 = vrot.lane.b32.xlu1 %v903_v16, %s2669_s3  ;;  %v1059_v16 = vsub.s32 1, %v2745_v17 }
0x13c9   :  { %v905_v18 = vpop.permute.xlu1 %904 }
0x13ca   :  { %2292 = vmatmul.mubr.msk.f32.vlgmr.msra.gmra.mrb[8].mxu0 %vm35_vm0, %v905_v18  ;;  %v1031_v60 = vsel %vm1010_vm9, %v905_v18, %v2805_v22  ;;  %v1022_v61 = vsel %vm1010_vm9, %v2805_v22, %v905_v18  ;;  %v1037_v22 = vrot.slane %v1025_v62, 4  ;;  %v1060_v18 = vrot.slane %v2751_v19, %v1059_v16 }
0x13cb   :  { %2313 = vmatprep.mubr.msk.f32.mxu0 %vm2666_vm1, %v2667_v11  ;;  %2459 = vmatpush3.bf16.msra.mxu0 %v2910_v50  ;;  %v1046_v0 = vrot.slane %v1031_v60, 4  ;;  %v1034_v1 = vrot.slane %v1022_v61, 6 }
0x13cc   :  { %2460 = vmatprep.subr.bf16.mxu0 %v2665_v6 }
0x13cd   :  { %v1055_v13 = vsel %vm147_vm3, %v1054_v7, %v1046_v0 }
0x13cf   :  { %2462 = vmatpush3.bf16.msra.mxu0 %v2921_v53 }
0x13d0   :  { %2469 = vmatprep.subr.bf16.mxu0 %v2665_v6 }
0x13d2   :  { %2314 = vmatmul.mubr.f32.vlgmr.msra.gmra.mrb[10].mxu0 %v2667_v11 }
0x13d3   :  { %2471 = vmatpush3.bf16.msra.mxu0 %v2910_v50  ;;  %2335 = vmatprep.mubr.msk.f32.mxu0 %vm2666_vm1, %v2667_v11 }
0x13d4   :  { %2472 = vmatprep.subr.bf16.mxu0 %v2665_v6 }
0x13d7   :  { %2474 = vmatpush3.bf16.msra.mxu0 %v2921_v53 }
0x13d8   :  { %2481 = vmatprep.subr.bf16.mxu0 %v2665_v6 }
0x149d   :  { %v974_v20 = vpop.f32.mrb[8].mxu0 }
0x149e   :  { %v979_v23 = vrot.slane %v974_v20, 2  ;;  %v2293_v24 = vpop.f32.mrb[9].mxu0 }
0x14a0   :  { %v981_v25 = vadd.f32 %v979_v23, %v2774_v42 }
0x14a2   :  { %v2085_v26 = vmul.f32 -1.442695, %v981_v25 }
0x14a4   :  { %2569 = vpow2.f32 %v2085_v26 }
0x14a5   :  { %2571 = vtanh.f32 %v981_v25 }
0x14ae   :  { %v2570_v27 = vpop.eup %2569 }
0x14af   :  { %v986_v28 = vadd.f32 1.0, %v2570_v27  ;;  %v2572_v29 = vpop.eup %2571 }
0x14b1   :  { %2573 = vrcp.f32 %v986_v28 }
0x14bb   :  { %v2574_v30 = vpop.eup %2573 }
0x14bc   :  { %v989_v32 = vsel %vm2778_vm8, %v2572_v29, %v2574_v30 }
0x14bd   :  { %995 = vrot.lane.b32.xlu0 %v989_v32, %s2668_s30  ;;  %v993_v37 = vmul.f32 %v991_v36, %v989_v32 }
0x152f   :  { %v996_v33 = vpop.permute.xlu0 %995 }
0x1530   :  { %v998_v35 = vmul.f32 %v996_v33, %v989_v32 }
0x1532   :  { %1000 = vrot.lane.b32.xlu1 %v998_v35, %s2669_s3 }
0x15a4   :  { %v1001_v42 = vpop.permute.xlu1 %1000 }
0x15a5   :  { %v1003_v38 = vadd.f32 %v1001_v42, %v993_v37 }
0x15a7   :  { %2575 = vtanh.f32 %v1003_v38 }
0x15b1   :  { %v2576_v43 = vpop.eup %2575 }
0x15b2   :  { %1006 = vrot.lane.b32.xlu0 %v2576_v43, %s2668_s30 }
0x1624   :  { %v1007_v54 = vpop.permute.xlu0 %1006 }
0x1625   :  { %v1009_v56 = vmul.f32 %v1007_v54, %v989_v32 }
0x1627   :  { %v1015_v57 = vrot.slane %v1009_v56, 6 }
0x1629   :  { %1016 = vrot.lane.b32.xlu1 %v1015_v57, %s2669_s3 }
0x169b   :  { %v1017_v2 = vpop.permute.xlu1 %1016 }
0x169c   :  { %v1019_v5 = vsel %vm1010_vm9, %v2788_v58, %v1017_v2  ;;  %v1032_v47 = vsel %vm1010_vm9, %v1017_v2, %v2788_v58  ;;  %v1226_v58 = vpop.f32.mrb[10].mxu0 }
0x169d   :  { %v1049_v8 = vrot.slane %v1032_v47, 2  ;;  %v1051_v9 = vsel %vm145_vm2, %v1019_v5, %v1034_v1  ;;  %v2315_v15 = vpop.f32.mrb[11].mxu0 }
0x169e   :  { %v1052_v10 = vsel %vm147_vm3, %v1051_v9, %v1037_v22 }
0x169f   :  { %v1053_v4 = vsel %vm149_vm4, %v1052_v10, %v1040_v55  ;;  %v1056_v31 = vsel %vm149_vm4, %v1055_v13, %v1049_v8 }
0x16a0   :  { %2302 = vmatprep.mubr.msk.f32.mxu1 %vm35_vm0, %v1053_v4 }
0x16a1   :  { %2303 = vmatmul.mubr.msk.f32.vlgmr.msra.gmra.mrb[8].mxu1 %vm35_vm0, %v1056_v31 }
0x16a2   :  { %2465 = vmatpush3.bf16.msra.mxu1 %v2910_v50  ;;  %2324 = vmatprep.mubr.msk.f32.mxu1 %vm2666_vm1, %v2667_v11 }
0x16a3   :  { %2466 = vmatprep.subr.bf16.mxu1 %v2665_v6 }
0x16a6   :  { %2468 = vmatpush3.bf16.msra.mxu1 %v2921_v53 }
0x16a7   :  { %2475 = vmatprep.subr.bf16.mxu1 %v2665_v6 }
0x1774   :  { %v2304_v20 = vpop.f32.mrb[8].mxu1 }
0x1775   :  { %v1139_v23 = vadd.f32 %v2304_v20, %v1060_v18  ;;  %v1133_v24 = vpop.f32.mrb[9].mxu1 }
0x1776   :  { %v1134_v25 = vadd.f32 %v1133_v24, %v1060_v18 }
0x1777   :  { %v1143_v26 = vrot.slane %v1139_v23, 6  ;;  %v1145_v27 = vrot.slane %v1139_v23, 2 }
0x1778   :  { %v1148_v28 = vrot.slane %v1134_v25, 6  ;;  %v1150_v29 = vrot.slane %v1134_v25, 2 }
0x1779   :  { %v1152_v30 = vsel %vm145_vm2, %v1143_v26, %v1145_v27 }
0x177a   :  { %v1155_v32 = vsel %vm145_vm2, %v1148_v28, %v1150_v29  ;;  %v1153_v33 = vsel %vm147_vm3, %v1152_v30, %v1143_v26 }
0x177b   :  { %v1154_v35 = vsel %vm149_vm4, %v1153_v33, %v1145_v27  ;;  %v1156_v17 = vsel %vm147_vm3, %v1155_v32, %v1148_v28 }
0x177c   :  { %v2985_v19 = vsel %vm2758_vm5, %v1134_v25, %v1154_v35  ;;  %v1157_v36 = vsel %vm149_vm4, %v1156_v17, %v1150_v29 }
0x177d   :  { %v1230_v37 = vadd.f32 %v1226_v58, %v2985_v19  ;;  %v2991_v42 = vsel %vm2758_vm5, %v1139_v23, %v1157_v36 }
0x177f   :  { %v2088_v38 = vmul.f32 -1.442695, %v1230_v37 }
0x1781   :  { %2577 = vpow2.f32 %v2088_v38 }
0x1782   :  { %2579 = vtanh.f32 %v1230_v37 }
0x178b   :  { %v2578_v40 = vpop.eup %2577 }
0x178c   :  { %v1235_v12 = vadd.f32 1.0, %v2578_v40  ;;  %v2580_v41 = vpop.eup %2579 }
0x178e   :  { %2581 = vrcp.f32 %v1235_v12 }
0x1798   :  { %v2582_v43 = vpop.eup %2581 }
0x1799   :  { %v1238_v14 = vsel %vm2778_vm8, %v2580_v41, %v2582_v43 }
0x179a   :  { %1241 = vrot.lane.b32.xlu0 %v1238_v14, %s2668_s30  ;;  %v1239_v34 = vmul.f32 0.0, %v1238_v14 }
0x180c   :  { %v1242_v44 = vpop.permute.xlu0 %1241 }
0x180d   :  { %v1244_v45 = vmul.f32 %v1242_v44, %v1238_v14 }
0x180f   :  { %1246 = vrot.lane.b32.xlu1 %v1244_v45, %s2669_s3 }
0x1881   :  { %v1247_v48 = vpop.permute.xlu1 %1246 }
0x1882   :  { %v1249_v49 = vadd.f32 %v1247_v48, %v1239_v34 }
0x1884   :  { %2583 = vtanh.f32 %v1249_v49  ;;  %v1344_v5 = vrot.slane %v1249_v49, 6 }
0x188e   :  { %v2584_v51 = vpop.eup %2583 }
0x188f   :  { %1252 = vrot.lane.b32.xlu0 %v2584_v51, %s2668_s30 }
0x1901   :  { %v1253_v52 = vpop.permute.xlu0 %1252 }
0x1902   :  { %v1255_v54 = vmul.f32 %v1253_v52, %v1238_v14 }
0x1904   :  { %1257 = vrot.lane.b32.xlu1 %v1255_v54, %s2669_s3 }
0x1976   :  { %v2999_v56 = vpop.permute.xlu1 %1257 }
0x1977   :  { %2325 = vmatmul.mubr.msk.f32.vlgmr.msra.gmra.mrb[10].mxu1 %vm35_vm0, %v2999_v56 }
0x1978   :  { %2477 = vmatpush3.bf16.msra.mxu1 %v2910_v50  ;;  %2346 = vmatprep.mubr.msk.f32.mxu1 %vm2666_vm1, %v2667_v11 }
0x1979   :  { %2478 = vmatprep.subr.bf16.mxu1 %v2665_v6 }
0x197c   :  { %2480 = vmatpush3.bf16.msra.mxu1 %v2921_v53 }
0x197d   :  { %2487 = vmatprep.subr.bf16.mxu1 %v2665_v6 }
0x1a4a   :  { %v1327_v57 = vpop.f32.mrb[10].mxu1 }
0x1a4b   :  { %v1332_v59 = vrot.slane %v1327_v57, 6  ;;  %v2326_v60 = vpop.f32.mrb[11].mxu1 }
0x1a4d   :  { %v1334_v61 = vadd.f32 %v1332_v59, %v2985_v19 }
0x1a4f   :  { %v2090_v62 = vmul.f32 -1.442695, %v1334_v61 }
0x1a51   :  { %2585 = vpow2.f32 %v2090_v62 }
0x1a52   :  { %2587 = vtanh.f32 %v1334_v61 }
0x1a5b   :  { %v2586_v39 = vpop.eup %2585 }
0x1a5c   :  { %v1339_v63 = vadd.f32 1.0, %v2586_v39  ;;  %v2588_v0 = vpop.eup %2587 }
0x1a5e   :  { %2589 = vrcp.f32 %v1339_v63 }
0x1a68   :  { %v2590_v1 = vpop.eup %2589 }
0x1a69   :  { %v1342_v2 = vsel %vm2778_vm8, %v2588_v0, %v2590_v1 }
0x1a6a   :  { %1348 = vrot.lane.b32.xlu0 %v1342_v2, %s2668_s30  ;;  %v1346_v47 = vmul.f32 %v1344_v5, %v1342_v2 }
0x1adc   :  { %v1349_v3 = vpop.permute.xlu0 %1348 }
0x1add   :  { %v1351_v22 = vmul.f32 %v1349_v3, %v1342_v2 }
0x1adf   :  { %1353 = vrot.lane.b32.xlu1 %v1351_v22, %s2669_s3 }
0x1b51   :  { %v1354_v55 = vpop.permute.xlu1 %1353 }
0x1b52   :  { %v1356_v7 = vadd.f32 %v1354_v55, %v1346_v47 }
0x1b54   :  { %2591 = vtanh.f32 %v1356_v7  ;;  %v1452_v29 = vrot.slane %v1356_v7, 6 }
0x1b5e   :  { %v2592_v8 = vpop.eup %2591 }
0x1b5f   :  { %1359 = vrot.lane.b32.xlu0 %v2592_v8, %s2668_s30 }
0x1bd1   :  { %v1360_v9 = vpop.permute.xlu0 %1359 }
0x1bd2   :  { %v1362_v10 = vmul.f32 %v1360_v9, %v1342_v2 }
0x1bd4   :  { %v1364_v13 = vrot.slane %v1362_v10, 2 }
0x1bd6   :  { %1365 = vrot.lane.b32.xlu1 %v1364_v13, %s2669_s3 }
0x1c48   :  { %v3016_v4 = vpop.permute.xlu1 %1365 }
0x1c49   :  { %2336 = vmatmul.mubr.msk.f32.vlgmr.msra.gmra.mrb[12].mxu0 %vm35_vm0, %v3016_v4 }
0x1c4a   :  { %2483 = vmatpush3.bf16.msra.mxu0 %v2910_v50  ;;  %2357 = vmatprep.mubr.msk.f32.mxu0 %vm2666_vm1, %v2667_v11 }
0x1c4b   :  { %2484 = vmatprep.subr.bf16.mxu0 %v2665_v6 }
0x1c4e   :  { %2486 = vmatpush3.bf16.msra.mxu0 %v2921_v53 }
0x1c4f   :  { %2493 = vmatprep.subr.bf16.mxu0 %v2665_v6 }
0x1d1c   :  { %v1435_v31 = vpop.f32.mrb[12].mxu0 }
0x1d1d   :  { %v1440_v58 = vrot.slane %v1435_v31, 4  ;;  %v2337_v15 = vpop.f32.mrb[13].mxu0 }
0x1d1f   :  { %v1442_v16 = vadd.f32 %v1440_v58, %v2985_v19 }
0x1d21   :  { %v2092_v18 = vmul.f32 -1.442695, %v1442_v16 }
0x1d23   :  { %2593 = vpow2.f32 %v2092_v18 }
0x1d24   :  { %2595 = vtanh.f32 %v1442_v16 }
0x1d2d   :  { %v2594_v20 = vpop.eup %2593 }
0x1d2e   :  { %v1447_v23 = vadd.f32 1.0, %v2594_v20  ;;  %v2596_v24 = vpop.eup %2595 }
0x1d30   :  { %2597 = vrcp.f32 %v1447_v23 }
0x1d3a   :  { %v2598_v25 = vpop.eup %2597 }
0x1d3b   :  { %v1450_v26 = vsel %vm2778_vm8, %v2596_v24, %v2598_v25 }
0x1d3c   :  { %1456 = vrot.lane.b32.xlu0 %v1450_v26, %s2668_s30  ;;  %v1454_v30 = vmul.f32 %v1452_v29, %v1450_v26 }
0x1dae   :  { %v1457_v27 = vpop.permute.xlu0 %1456 }
0x1daf   :  { %v1459_v28 = vmul.f32 %v1457_v27, %v1450_v26 }
0x1db1   :  { %1461 = vrot.lane.b32.xlu1 %v1459_v28, %s2669_s3 }
0x1e23   :  { %v1462_v32 = vpop.permute.xlu1 %1461 }
0x1e24   :  { %v1464_v33 = vadd.f32 %v1462_v32, %v1454_v30 }
0x1e26   :  { %2599 = vtanh.f32 %v1464_v33  ;;  %v1560_v54 = vrot.slane %v1464_v33, 6 }
0x1e30   :  { %v2600_v35 = vpop.eup %2599 }
0x1e31   :  { %1467 = vrot.lane.b32.xlu0 %v2600_v35, %s2668_s30 }
0x1ea3   :  { %v1468_v17 = vpop.permute.xlu0 %1467 }
0x1ea4   :  { %v1470_v36 = vmul.f32 %v1468_v17, %v1450_v26 }
0x1ea6   :  { %v1472_v37 = vrot.slane %v1470_v36, 4 }
0x1ea8   :  { %1473 = vrot.lane.b32.xlu1 %v1472_v37, %s2669_s3 }
0x1f1a   :  { %v3033_v38 = vpop.permute.xlu1 %1473 }
0x1f1b   :  { %2347 = vmatmul.mubr.msk.f32.vlgmr.msra.gmra.mrb[12].mxu1 %vm35_vm0, %v3033_v38 }
0x1f1c   :  { %2489 = vmatpush3.bf16.msra.mxu1 %v2910_v50  ;;  %2368 = vmatprep.mubr.msk.f32.mxu1 %vm2666_vm1, %v2667_v11 }
0x1f1d   :  { %2490 = vmatprep.subr.bf16.mxu1 %v2665_v6 }
0x1f20   :  { %2492 = vmatpush3.bf16.msra.mxu1 %v2921_v53 }
0x1f21   :  { %2499 = vmatprep.subr.bf16.mxu1 %v2665_v6 }
0x1fee   :  { %v1543_v40 = vpop.f32.mrb[12].mxu1 }
0x1fef   :  { %v1548_v12 = vrot.slane %v1543_v40, 2  ;;  %v2348_v41 = vpop.f32.mrb[13].mxu1 }
0x1ff1   :  { %v1550_v43 = vadd.f32 %v1548_v12, %v2985_v19 }
0x1ff3   :  { %v2094_v14 = vmul.f32 -1.442695, %v1550_v43 }
0x1ff5   :  { %2601 = vpow2.f32 %v2094_v14 }
0x1ff6   :  { %2603 = vtanh.f32 %v1550_v43 }
0x1fff   :  { %v2602_v44 = vpop.eup %2601 }
0x2000   :  { %v1555_v45 = vadd.f32 1.0, %v2602_v44  ;;  %v2604_v34 = vpop.eup %2603 }
0x2002   :  { %2605 = vrcp.f32 %v1555_v45 }
0x200c   :  { %v2606_v48 = vpop.eup %2605 }
0x200d   :  { %v1558_v49 = vsel %vm2778_vm8, %v2604_v34, %v2606_v48 }
0x200e   :  { %1564 = vrot.lane.b32.xlu0 %v1558_v49, %s2668_s30  ;;  %v1562_v57 = vmul.f32 %v1560_v54, %v1558_v49 }
0x2080   :  { %v1565_v51 = vpop.permute.xlu0 %1564 }
0x2081   :  { %v1567_v52 = vmul.f32 %v1565_v51, %v1558_v49 }
0x2083   :  { %1569 = vrot.lane.b32.xlu1 %v1567_v52, %s2669_s3 }
0x20f5   :  { %v1570_v19 = vpop.permute.xlu1 %1569 }
0x20f6   :  { %v1572_v59 = vadd.f32 %v1570_v19, %v1562_v57 }
0x20f8   :  { %2607 = vtanh.f32 %v1572_v59  ;;  %v1665_v10 = vrot.slane %v1572_v59, 6 }
0x2102   :  { %v2608_v60 = vpop.eup %2607 }
0x2103   :  { %1575 = vrot.lane.b32.xlu0 %v2608_v60, %s2668_s30 }
0x2175   :  { %v1576_v61 = vpop.permute.xlu0 %1575 }
0x2176   :  { %v1578_v62 = vmul.f32 %v1576_v61, %v1558_v49 }
0x2178   :  { %v1580_v39 = vrot.slane %v1578_v62, 6 }
0x217a   :  { %1581 = vrot.lane.b32.xlu1 %v1580_v39, %s2669_s3 }
0x21ec   :  { %v3050_v63 = vpop.permute.xlu1 %1581 }
0x21ed   :  { %2358 = vmatmul.mubr.msk.f32.vlgmr.msra.gmra.mrb[14].mxu0 %vm35_vm0, %v3050_v63 }
0x21ee   :  { %2495 = vmatpush3.bf16.msra.mxu0 %v2910_v50  ;;  %2379 = vmatprep.mubr.msk.f32.mxu0 %vm2666_vm1, %v2667_v11 }
0x21ef   :  { %2496 = vmatprep.subr.bf16.mxu0 %v2665_v6 }
0x21f2   :  { %2498 = vmatpush3.bf16.msra.mxu0 %v2921_v53 }
0x22c0   :  { %v1651_v0 = vpop.f32.mrb[14].mxu0 }
0x22c1   :  { %v1655_v1 = vadd.f32 %v1651_v0, %v2991_v42  ;;  %v2359_v2 = vpop.f32.mrb[15].mxu0 }
0x22c3   :  { %v2096_v3 = vmul.f32 -1.442695, %v1655_v1 }
0x22c5   :  { %2609 = vpow2.f32 %v2096_v3 }
0x22c6   :  { %2611 = vtanh.f32 %v1655_v1 }
0x22cf   :  { %v2610_v22 = vpop.eup %2609 }
0x22d0   :  { %v1660_v5 = vadd.f32 1.0, %v2610_v22  ;;  %v2612_v47 = vpop.eup %2611 }
0x22d2   :  { %2613 = vrcp.f32 %v1660_v5 }
0x22dc   :  { %v2614_v55 = vpop.eup %2613 }
0x22dd   :  { %v1663_v7 = vsel %vm2778_vm8, %v2612_v47, %v2614_v55 }
0x22de   :  { %1669 = vrot.lane.b32.xlu0 %v1663_v7, %s2668_s30  ;;  %v1667_v13 = vmul.f32 %v1665_v10, %v1663_v7 }
0x2350   :  { %v1670_v8 = vpop.permute.xlu0 %1669 }
0x2351   :  { %v1672_v9 = vmul.f32 %v1670_v8, %v1663_v7 }
0x2353   :  { %1674 = vrot.lane.b32.xlu1 %v1672_v9, %s2669_s3 }
0x23c5   :  { %v1675_v31 = vpop.permute.xlu1 %1674 }
0x23c6   :  { %v1677_v58 = vadd.f32 %v1675_v31, %v1667_v13 }
0x23c8   :  { %2615 = vtanh.f32 %v1677_v58  ;;  %v1772_v32 = vrot.slane %v1677_v58, 6 }
0x23d2   :  { %v2616_v15 = vpop.eup %2615 }
0x23d3   :  { %1680 = vrot.lane.b32.xlu0 %v2616_v15, %s2668_s30 }
0x2445   :  { %v1681_v16 = vpop.permute.xlu0 %1680 }
0x2446   :  { %v1683_v18 = vmul.f32 %v1681_v16, %v1663_v7 }
0x2448   :  { %1685 = vrot.lane.b32.xlu1 %v1683_v18, %s2669_s3 }
0x24ba   :  { %v3066_v20 = vpop.permute.xlu1 %1685 }
0x24bb   :  { %2369 = vmatmul.mubr.msk.f32.vlgmr.msra.gmra.mrb[14].mxu1 %vm35_vm0, %v3066_v20 }
0x24bc   :  { %2501 = vmatpush3.bf16.msra.mxu1 %v2910_v50  ;;  %2390 = vmatprep.mubr.msk.f32.mxu1 %vm2666_vm1, %v2667_v11 }
0x24bd   :  { %2502 = vmatprep.subr.bf16.mxu1 %v2665_v6 }
0x24c0   :  { %2504 = vmatpush3.bf16.msra.mxu1 %v2921_v53 }
0x258e   :  { %v1755_v23 = vpop.f32.mrb[14].mxu1 }
0x258f   :  { %v1760_v24 = vrot.slane %v1755_v23, 6  ;;  %v2370_v25 = vpop.f32.mrb[15].mxu1 }
0x2591   :  { %v1762_v26 = vadd.f32 %v1760_v24, %v2991_v42 }
0x2593   :  { %v2098_v27 = vmul.f32 -1.442695, %v1762_v26 }
0x2595   :  { %2617 = vpow2.f32 %v2098_v27 }
0x2596   :  { %2619 = vtanh.f32 %v1762_v26 }
0x259f   :  { %v2618_v28 = vpop.eup %2617 }
0x25a0   :  { %v1767_v29 = vadd.f32 1.0, %v2618_v28  ;;  %v2620_v30 = vpop.eup %2619 }
0x25a2   :  { %2621 = vrcp.f32 %v1767_v29 }
0x25ac   :  { %v2622_v50 = vpop.eup %2621 }
0x25ad   :  { %v1770_v11 = vsel %vm2778_vm8, %v2620_v30, %v2622_v50 }
0x25ae   :  { %1776 = vrot.lane.b32.xlu0 %v1770_v11, %s2668_s30  ;;  %v1774_v33 = vmul.f32 %v1772_v32, %v1770_v11 }
0x2620   :  { %v1777_v6 = vpop.permute.xlu0 %1776 }
0x2621   :  { %v1779_v53 = vmul.f32 %v1777_v6, %v1770_v11 }
0x2623   :  { %1781 = vrot.lane.b32.xlu1 %v1779_v53, %s2669_s3 }
0x2695   :  { %v1782_v35 = vpop.permute.xlu1 %1781 }
0x2696   :  { %v1784_v17 = vadd.f32 %v1782_v35, %v1774_v33 }
0x2698   :  { %2623 = vtanh.f32 %v1784_v17  ;;  %v1880_v59 = vrot.slane %v1784_v17, 6 }
0x26a2   :  { %v2624_v36 = vpop.eup %2623 }
0x26a3   :  { %1787 = vrot.lane.b32.xlu0 %v2624_v36, %s2668_s30 }
0x2715   :  { %v1788_v37 = vpop.permute.xlu0 %1787 }
0x2716   :  { %v1790_v40 = vmul.f32 %v1788_v37, %v1770_v11  ;;  %v2022_v11 = vsel %vm1010_vm9, %v3050_v63, %v3066_v20 }
0x2717   :  { %v2034_v17 = vrot.slane %v2022_v11, 2 }
0x2718   :  { %v1792_v12 = vrot.slane %v1790_v40, 2 }
0x271a   :  { %1793 = vrot.lane.b32.xlu1 %v1792_v12, %s2669_s3 }
0x278c   :  { %v3082_v41 = vpop.permute.xlu1 %1793 }
0x278d   :  { %2380 = vmatmul.mubr.msk.f32.vlgmr.msra.gmra.mrb[16].mxu0 %vm35_vm0, %v3082_v41  ;;  %v2024_v46 = vsel %vm1010_vm9, %v3082_v41, %v3033_v38  ;;  %v2019_v30 = vsel %vm1010_vm9, %v3033_v38, %v3082_v41 }
0x278e   :  { %v2037_v50 = vrot.slane %v2024_v46, 6  ;;  %v2031_v33 = vrot.slane %v2019_v30, 4 }
0x2860   :  { %v1863_v43 = vpop.f32.mrb[16].mxu0 }
0x2861   :  { %v1868_v14 = vrot.slane %v1863_v43, 4  ;;  %v2381_v44 = vpop.f32.mrb[17].mxu0 }
0x2863   :  { %v1870_v45 = vadd.f32 %v1868_v14, %v2991_v42 }
0x2865   :  { %v2100_v34 = vmul.f32 -1.442695, %v1870_v45 }
0x2867   :  { %2625 = vpow2.f32 %v2100_v34 }
0x2868   :  { %2627 = vtanh.f32 %v1870_v45 }
0x2871   :  { %v2626_v48 = vpop.eup %2625 }
0x2872   :  { %v1875_v49 = vadd.f32 1.0, %v2626_v48  ;;  %v2628_v51 = vpop.eup %2627 }
0x2874   :  { %2629 = vrcp.f32 %v1875_v49 }
0x287e   :  { %v2630_v52 = vpop.eup %2629 }
0x287f   :  { %v1878_v54 = vsel %vm2778_vm8, %v2628_v51, %v2630_v52 }
0x2880   :  { %1884 = vrot.lane.b32.xlu0 %v1878_v54, %s2668_s30  ;;  %v1882_v60 = vmul.f32 %v1880_v59, %v1878_v54 }
0x28f2   :  { %v1885_v57 = vpop.permute.xlu0 %1884 }
0x28f3   :  { %v1887_v19 = vmul.f32 %v1885_v57, %v1878_v54 }
0x28f5   :  { %1889 = vrot.lane.b32.xlu1 %v1887_v19, %s2669_s3 }
0x2967   :  { %v1890_v61 = vpop.permute.xlu1 %1889 }
0x2968   :  { %v1892_v62 = vadd.f32 %v1890_v61, %v1882_v60 }
0x296a   :  { %2631 = vtanh.f32 %v1892_v62  ;;  %v1988_v16 = vrot.slane %v1892_v62, 6 }
0x2974   :  { %v2632_v39 = vpop.eup %2631 }
0x2975   :  { %1895 = vrot.lane.b32.xlu0 %v2632_v39, %s2668_s30 }
0x29e7   :  { %v1896_v0 = vpop.permute.xlu0 %1895 }
0x29e8   :  { %v1898_v1 = vmul.f32 %v1896_v0, %v1878_v54 }
0x29ea   :  { %v1900_v2 = vrot.slane %v1898_v1, 4 }
0x29ec   :  { %1901 = vrot.lane.b32.xlu1 %v1900_v2, %s2669_s3 }
0x2a5e   :  { %v1902_v3 = vpop.permute.xlu1 %1901 }
0x2a5f   :  { %2391 = vmatmul.mubr.msk.f32.vlgmr.msra.gmra.mrb[16].mxu1 %vm35_vm0, %v1902_v3  ;;  %v2025_v28 = vsel %vm1010_vm9, %v1902_v3, %v3016_v4  ;;  %v2016_v29 = vsel %vm1010_vm9, %v3016_v4, %v1902_v3  ;;  %v2023_v4 = vsel %vm1010_vm9, %v3066_v20, %v3050_v63 }
0x2a60   :  { %v2040_v6 = vrot.slane %v2025_v28, 4  ;;  %v2028_v53 = vrot.slane %v2016_v29, 6  ;;  %v2048_v36 = vsel %vm145_vm2, %v2023_v4, %v2037_v50 }
0x2a62   :  { %v2049_v12 = vsel %vm147_vm3, %v2048_v36, %v2040_v6 }
0x2b32   :  { %v1971_v22 = vpop.f32.mrb[16].mxu1 }
0x2b33   :  { %v1976_v5 = vrot.slane %v1971_v22, 2  ;;  %v2392_v47 = vpop.f32.mrb[17].mxu1 }
0x2b35   :  { %v1978_v55 = vadd.f32 %v1976_v5, %v2991_v42 }
0x2b37   :  { %v2102_v7 = vmul.f32 -1.442695, %v1978_v55 }
0x2b39   :  { %2633 = vpow2.f32 %v2102_v7 }
0x2b3a   :  { %2635 = vtanh.f32 %v1978_v55 }
0x2b43   :  { %v2634_v8 = vpop.eup %2633 }
0x2b44   :  { %v1983_v9 = vadd.f32 1.0, %v2634_v8  ;;  %v2636_v10 = vpop.eup %2635 }
0x2b46   :  { %2637 = vrcp.f32 %v1983_v9 }
0x2b50   :  { %v2638_v13 = vpop.eup %2637 }
0x2b51   :  { %v1986_v31 = vsel %vm2778_vm8, %v2636_v10, %v2638_v13 }
0x2b52   :  { %1992 = vrot.lane.b32.xlu0 %v1986_v31, %s2668_s30  ;;  %v1990_v18 = vmul.f32 %v1988_v16, %v1986_v31 }
0x2bc4   :  { %v1993_v58 = vpop.permute.xlu0 %1992 }
0x2bc5   :  { %v1995_v15 = vmul.f32 %v1993_v58, %v1986_v31 }
0x2bc7   :  { %1997 = vrot.lane.b32.xlu1 %v1995_v15, %s2669_s3 }
0x2c39   :  { %v1998_v42 = vpop.permute.xlu1 %1997 }
0x2c3a   :  { %v2000_v23 = vadd.f32 %v1998_v42, %v1990_v18 }
0x2c3c   :  { %2639 = vtanh.f32 %v2000_v23 }
0x2c46   :  { %v2640_v24 = vpop.eup %2639 }
0x2c47   :  { %2003 = vrot.lane.b32.xlu0 %v2640_v24, %s2668_s30 }
0x2cb9   :  { %v2004_v25 = vpop.permute.xlu0 %2003 }
0x2cba   :  { %v2006_v26 = vmul.f32 %v2004_v25, %v1986_v31 }
0x2cbc   :  { %v2009_v27 = vrot.slane %v2006_v26, 6 }
0x2cbe   :  { %2010 = vrot.lane.b32.xlu1 %v2009_v27, %s2669_s3 }
0x2d30   :  { %v2011_v32 = vpop.permute.xlu1 %2010 }
0x2d31   :  { %v2013_v38 = vsel %vm1010_vm9, %v2999_v56, %v2011_v32  ;;  %v2026_v35 = vsel %vm1010_vm9, %v2011_v32, %v2999_v56 }
0x2d32   :  { %v2043_v37 = vrot.slane %v2026_v35, 2  ;;  %v2045_v40 = vsel %vm145_vm2, %v2013_v38, %v2028_v53 }
0x2d33   :  { %v2046_v63 = vsel %vm147_vm3, %v2045_v40, %v2031_v33 }
0x2d34   :  { %v2047_v20 = vsel %vm149_vm4, %v2046_v63, %v2034_v17  ;;  %v2050_v41 = vsel %vm149_vm4, %v2049_v12, %v2043_v37 }
0x2d35   :  { %2052 = vst.msk [vmem:[#allocation2 + $0x8] sm:$0xff] %vm35_vm0, %v2050_v41  ;;  %2051 = vst.msk [vmem:[#allocation2] sm:$0xff] %vm35_vm0, %v2047_v20 }
0x2d36   :  { %2652 = shalt.err (!%p2649_p4)
}
0x2d37   :  { %s2653_s24 = scalar_lea.hbm %s3151_s2, 256 }
0x2d38   :  { %p2654_p5 = scmp.ne.s32.totalorder %s3151_s2, %s2653_s24  ;;  %p2657_p6 = scmp.lt.u32.totalorder %s2653_s24, %s3151_s2 }
0x2d3a   :  { %p2659_p7 = pnand %p2657_p6, %p2654_p5 }
0x2d3c   :  { %2662 = shalt.err (!%p2659_p7)
}
0x2d3d   :  { %s2671_s0 = smov 128   ;;  %s2672_s29 = smov 8  }
0x2d3e   :  { %2064 = dma.vmem_to_hbm [thread:$0]  %s2059_s20, 256, %s3151_s2, [#allocation3], %s2671_s0, %s2671_s0, %s2672_s29  }
0x2d3f   :  { %2663 = dma.done.wait [#allocation3], 256  }
0x2d40   :  { %2664 = vsyncadd [#allocation3], 4294967040 }
0x2d41   :  { %2068 = vsyncpa [#allocation3], 1 }

</bundles_post_ra>
